<compile_context>
chip_gen: v7x
topology: tpu7x:2x2x1
jax: 0.10.0
libtpu: 0.0.40
codegen_flags: <defaults>
</compile_context>

<pallas_src>
import functools

import numpy as np

import jax
import jax.numpy as jnp
from jax import lax
from jax.experimental import pallas as pl
from jax.experimental.pallas import tpu as pltpu  # noqa: F401  (TPU backend; kept for batched-variant CompilerParams)

NEGINF = -100000.0   # self.neginf in the PyTorch module
_LANES = 128         # f32 lane width; parameter slab / output tile are padded to this


# ----------------------------------------------------------------------------
# Host-side parameter packing (call once): 7 tensors -> 1 lane-aligned slab
# ----------------------------------------------------------------------------
def _slab_layout(D, E, H, K):
    """Sublane (row) offsets of each parameter inside the packed (rows, 128) slab."""
    def rnd8(n):
        return ((n + 7) // 8) * 8
    names = (("W_embed", D), ("b_embed", 1), ("W_interm", E), ("b_interm", 1),
             ("W_tag", H), ("b_tag", 1), ("y_transparams", K))
    offs, r = {}, 0
    for name, nrows in names:
        offs[name] = r
        r += rnd8(nrows)
    return offs, rnd8(r)


def pack_crf_params(params):
    """Pack weights/biases/transition into a single (rows, 128) f32 slab.

    Turns 11 kernel inputs into 2 (seq + slab) -> 2 input DMA descriptors for a
    latency-bound single-shot call.
    """
    D, E = params["W_embed"].shape
    _, H = params["W_interm"].shape
    K = params["y_transparams"].shape[0]
    assert params["W_interm"].shape[0] == E
    assert params["W_tag"].shape == (H, K * K)
    assert max(E, H, K * K, K) <= _LANES, "a parameter is wider than one 128-lane tile"
    offs, rows = _slab_layout(D, E, H, K)
    slab = jnp.zeros((rows, _LANES), jnp.float32)
    for name in ("W_embed", "b_embed", "W_interm", "b_interm",
                 "W_tag", "b_tag", "y_transparams"):
        w = jnp.asarray(params[name], jnp.float32)
        if w.ndim == 1:
            w = w[None, :]
        slab = slab.at[offs[name]:offs[name] + w.shape[0], :w.shape[1]].set(w)
    return slab, (D, E, H, K)


# ----------------------------------------------------------------------------
# Fused kernel: potential MLP + Viterbi DP + backtrace + normalized score mat
# ----------------------------------------------------------------------------
def _crf_pair_kernel(seq_ref, slab_ref, out_ref, feat_ref=None, *,
                     T, K, D, E, H, offs, start_idx):
    f32 = jnp.float32
    KK, TK = K * K, T * K
    neg = f32(NEGINF)

    # ---- static, sublane-aligned views into the single packed parameter slab ----
    oWE, oBE = offs["W_embed"], offs["b_embed"]
    oWI, oBI = offs["W_interm"], offs["b_interm"]
    oWT, oBT = offs["W_tag"], offs["b_tag"]
    oTR = offs["y_transparams"]
    we = slab_ref[oWE:oWE + D, 0:E]
    be = slab_ref[oBE:oBE + 1, 0:E]
    wi = slab_ref[oWI:oWI + E, 0:H]
    bi = slab_ref[oBI:oBI + 1, 0:H]
    wt = slab_ref[oWT:oWT + H, 0:KK]
    bt = slab_ref[oBT:oBT + 1, 0:KK]
    trans = slab_ref[oTR:oTR + K, 0:K]

    # ---- compute_potential: relu(embed) -> relu(intermlayer) -> hiddenTotag ----
    # NOTE: default MXU precision (covered by the 5e-2 potential tolerance); use
    # precision=lax.Precision.HIGHEST on these dots if tighter fp32 parity with
    # the PyTorch reference is ever required.
    x = seq_ref[...]                                                     # (T, D)
    h = jnp.maximum(jnp.dot(x, we, preferred_element_type=f32) + be, 0.0)
    h = jnp.maximum(jnp.dot(h, wi, preferred_element_type=f32) + bi, 0.0)
    feat_flat = jnp.dot(h, wt, preferred_element_type=f32) + bt          # (T, K*K) lane-dense

    # ---- relayout (T, K*K) -> (T*K, K): feat_tall[t*K+p, c] = feat_flat[t, p*K+c]
    # Done with K tiny 0/1 selection matmuls whose masks are built in-kernel from
    # iota (no DMA'd constants, no lane->sublane reshape).  Each timestep's (K,K)
    # block is then a sublane-aligned slice of feat_tall.
    r_sub = lax.broadcasted_iota(jnp.int32, (TK, T), 0)
    t_lane = lax.broadcasted_iota(jnp.int32, (TK, T), 1)
    feat_tall = jnp.zeros((TK, K), f32)
    for p in range(K):
        sel = (r_sub == t_lane * K + p).astype(f32)                      # sel[t*K+p, t] = 1
        feat_tall = feat_tall + jnp.dot(
            sel, feat_flat[:, p * K:(p + 1) * K], preferred_element_type=f32)
    if feat_ref is not None:            # validation-only output; absent in production
        feat_ref[...] = feat_tall

    # ---- decode_viterbi: DP recursion, statically unrolled (T small & static) ----
    # TODO(synk): for T >~ 32 switch to lax.fori_loop with a (T+1, K) VMEM scratch
    # so live row values stay inside the 64-vreg budget.
    lane_k = lax.broadcasted_iota(jnp.int32, (1, K), 1)
    sub_k = lax.broadcasted_iota(jnp.int32, (K, 1), 0)
    sub_t = lax.broadcasted_iota(jnp.int32, (T, 1), 0)
    row_idx = lax.broadcasted_iota(jnp.int32, (K, K), 0)

    score_rows = [jnp.where(lane_k == start_idx, 0.0, neg)]              # score_mat[0]
    bp_rows = [jnp.full((1, K), -1, jnp.int32)]                          # backpointer[0] (unused)
    prev_col = jnp.where(sub_k == start_idx, 0.0, neg)                   # (K, 1)
    body = jnp.zeros((T, K), f32)                                        # score_mat[1:], built in-loop
    for t in range(T):
        fs = feat_tall[t * K:(t + 1) * K, :] + trans                     # feat_score[t]
        sc = prev_col + fs                                               # rows = previous tag
        best = jnp.max(sc, axis=0, keepdims=True)                        # (1, K)
        arg = jnp.min(jnp.where(sc == best, row_idx, K),
                      axis=0, keepdims=True).astype(jnp.int32)           # first argmax
        score_rows.append(best)
        bp_rows.append(arg)
        body = jnp.where(sub_t == t, best, body)                         # overlaps with DP
        prev_col = jnp.transpose(best)                                   # (K, 1) carry

    # terminal max / argmax over score_mat[T, :] (no STOP state)
    score_T = score_rows[T]                                              # (1, K)
    opt = jnp.max(score_T, axis=1, keepdims=True)                        # (1, 1)
    cand = jnp.where(score_T == opt, lane_k.astype(f32), f32(K))
    best_idx = jnp.min(cand, axis=1, keepdims=True).astype(jnp.int32)    # (1, 1)

    # ---- _traverse_optimal_seq: fully on-device backtrace, (T, 1) columns ----
    ydec = jnp.where(sub_t == (T - 1), best_idx.astype(f32), 0.0)        # (T, 1)
    yscr = jnp.where(sub_t == (T - 1), opt, 0.0)                         # (T, 1)
    cur = best_idx
    for t in range(T, 1, -1):
        btag_f = jnp.sum(jnp.where(lane_k == cur, bp_rows[t].astype(f32), 0.0),
                         axis=1, keepdims=True)                          # backpointer[t, cur]
        btag = btag_f.astype(jnp.int32)
        sval = jnp.sum(jnp.where(lane_k == btag, score_rows[t - 1], 0.0),
                       axis=1, keepdims=True)                            # score_mat[t-1, btag]
        ydec = jnp.where(sub_t == (t - 2), btag_f, ydec)
        yscr = jnp.where(sub_t == (t - 2), sval, yscr)
        cur = btag

    # ---- _normalize_scoremat on rows 1..T (max-subtracted, same math) ----------
    m = jnp.max(body, axis=1, keepdims=True)
    e = jnp.exp(body - m)
    norm = e / jnp.sum(e, axis=1, keepdims=True)

    # ---- single lane-dense (T, 128) output tile -> one writeback DMA -----------
    base = K
    out_ref[:, 0:K] = norm
    out_ref[:, base:base + 1] = ydec
    out_ref[:, base + 1:base + 2] = yscr
    out_ref[:, base + 2:base + 3] = jnp.zeros((T, 1), f32) + opt
    out_ref[:, base + 3:_LANES] = jnp.zeros((T, _LANES - (base + 3)), f32)


# ----------------------------------------------------------------------------
# Wrapper
# ----------------------------------------------------------------------------
@functools.partial(jax.jit, static_argnames=("dims", "start_idx", "return_potential"))
def crf_pair_labeler_forward(seq, slab, dims, start_idx, return_potential=False):
    """forward(seq, method='viterbi') of CRF_Pair_Labeler.

    Args:
      seq:  (1, T, input_dim) observation sequence.
      slab: packed parameter slab from pack_crf_params(params).
      dims: static (input_dim, embed_dim, interm_dim, tagset_size).
      start_idx: static y_codebook['__START__'].
      return_potential: static; if True, additionally return the (T, K, K)
        pairwise potential (validation only; adds a second, lane-sparse output).

    Returns (y_decoded, y_scores, optimal_score, norm_scoremat[, potential]).
    """
    D, E, H, K = dims
    assert seq.shape[0] == 1 and seq.shape[2] == D
    T = seq.shape[1]
    assert K + 3 <= _LANES
    offs, _ = _slab_layout(D, E, H, K)
    x = seq[0].astype(jnp.float32)                                       # (T, D)

    kernel = functools.partial(_crf_pair_kernel, T=T, K=K, D=D, E=E, H=H,
                               offs=offs, start_idx=start_idx)
    out_shapes = (jax.ShapeDtypeStruct((T, _LANES), jnp.float32),)
    if return_potential:
        out_shapes = out_shapes + (jax.ShapeDtypeStruct((T * K, K), jnp.float32),)

    # TODO(synk): forward() is single-sequence (batch == 1) in the PyTorch module;
    # a batched variant should add a leading "parallel" grid axis over sequences
    # (uses v7x's second TensorCore, amortizes launch/DMA latency everywhere).
    outs = pl.pallas_call(kernel, out_shape=out_shapes)(x, slab)
    out = outs[0]

    norm = out[:, 0:K]
    ydec = out[:, K].astype(jnp.int32)
    yscore = out[:, K + 1]
    opt = out[0, K + 2]
    if return_potential:
        return ydec, yscore, opt, norm, outs[1].reshape(T, K, K)
    return ydec, yscore, opt, norm


# ----------------------------------------------------------------------------
# Pure-numpy references for validation
# ----------------------------------------------------------------------------
def _reference_dp(feat, trans, start_idx):
    """Numpy Viterbi / backtrace / normalize on a given (T, K, K) potential."""
    T, K, _ = feat.shape
    score = np.full((T + 1, K), NEGINF, np.float32)
    score[0, start_idx] = 0.0
    bp = np.full((T + 1, K), -1, np.int64)
    for t in range(T):
        s = score[t][:, None] + (feat[t] + trans)
        score[t + 1] = s.max(axis=0)
        bp[t + 1] = s.argmax(axis=0)
    opt = score[T].max()
    best = int(score[T].argmax())
    ydec, ysc = [best], [score[T, best]]
    cur = best
    for t in range(T, 1, -1):
        b = int(bp[t, cur])
        ydec.append(b)
        ysc.append(score[t - 1, b])
        cur = b
    e = np.exp(score[1:] - score[1:].max(axis=1, keepdims=True))
    norm = e / e.sum(axis=1, keepdims=True)
    return (np.array(ydec[::-1]), np.array(ysc[::-1], np.float32),
            np.float32(opt), norm)


def _reference_potential(x, p):
    h = np.maximum(x @ p["W_embed"] + p["b_embed"], 0.0)
    h = np.maximum(h @ p["W_interm"] + p["b_interm"], 0.0)
    return h @ p["W_tag"] + p["b_tag"]                                   # (T, K*K)


if __name__ == "__main__":
    # module config: embed_dim=16, interm_dim=16, relu, transmatrix_flag=True,
    # startstate_symb='__START__', stopstate_symb=None
    input_dim, embed_dim, interm_dim = 32, 16, 16
    y_codebook = {"__START__": 0, "A": 1, "B": 2, "C": 3,
                  "D": 4, "E": 5, "F": 6, "G": 7}
    K = len(y_codebook)
    start_idx = y_codebook["__START__"]
    T = 8  # seqlen

    key = jax.random.PRNGKey(0)
    ks = jax.random.split(key, 8)
    params = {
        "W_embed": 0.1 * jax.random.normal(ks[0], (input_dim, embed_dim), jnp.float32),
        "b_embed": 0.1 * jax.random.normal(ks[1], (1, embed_dim), jnp.float32),
        "W_interm": 0.1 * jax.random.normal(ks[2], (embed_dim, interm_dim), jnp.float32),
        "b_interm": 0.1 * jax.random.normal(ks[3], (1, interm_dim), jnp.float32),
        "W_tag": 0.1 * jax.random.normal(ks[4], (interm_dim, K * K), jnp.float32),
        "b_tag": 0.1 * jax.random.normal(ks[5], (1, K * K), jnp.float32),
    }
    # y_transparams: randn(K,K) with transitions INTO __START__ forbidden
    trans = jax.random.normal(ks[6], (K, K), jnp.float32)
    trans = trans.at[:, start_idx].set(NEGINF)
    params["y_transparams"] = trans

    seq = jax.random.normal(ks[7], (1, T, input_dim), jnp.float32)

    slab, dims = pack_crf_params(params)                                 # host-side, once

    # Validation-mode call (also returns the pairwise potential).
    outs = jax.block_until_ready(crf_pair_labeler_forward(
        seq, slab, dims=dims, start_idx=start_idx, return_potential=True))
    y_decoded, y_scores, optimal_score, norm_scoremat, feat = outs

    assert y_decoded.shape == (T,)
    assert y_scores.shape == (T,)
    assert norm_scoremat.shape == (T, K)
    assert feat.shape == (T, K, K)

    np_params = {k: np.asarray(v, np.float32) for k, v in params.items()}
    feat_np = np.asarray(feat)

    # Exact check of DP / backtrace / normalization against numpy run on the
    # kernel's own potential (no matmul-precision ambiguity in this path).
    ref_dec, ref_sc, ref_opt, ref_norm = _reference_dp(
        feat_np, np_params["y_transparams"], start_idx)
    np.testing.assert_array_equal(np.asarray(y_decoded), ref_dec)
    np.testing.assert_allclose(np.asarray(y_scores), ref_sc, rtol=1e-5, atol=1e-5)
    np.testing.assert_allclose(float(optimal_score), float(ref_opt), rtol=1e-5, atol=1e-5)
    np.testing.assert_allclose(np.asarray(norm_scoremat), ref_norm, rtol=1e-5, atol=1e-5)

    # Loose fidelity check of the fused MLP potential (tolerates MXU rounding).
    pot_ref = _reference_potential(np.asarray(seq[0], np.float32), np_params)
    np.testing.assert_allclose(feat_np, pot_ref.reshape(T, K, K), rtol=5e-2, atol=5e-2)

    # Production-mode call (single lane-dense output, no potential writeback).
    prod = jax.block_until_ready(crf_pair_labeler_forward(
        seq, slab, dims=dims, start_idx=start_idx, return_potential=False))
    np.testing.assert_array_equal(np.asarray(prod[0]), np.asarray(y_decoded))
    np.testing.assert_allclose(np.asarray(prod[1]), np.asarray(y_scores),
                               rtol=1e-6, atol=1e-6)
    np.testing.assert_allclose(float(prod[2]), float(optimal_score),
                               rtol=1e-6, atol=1e-6)
    np.testing.assert_allclose(np.asarray(prod[3]), np.asarray(norm_scoremat),
                               rtol=1e-6, atol=1e-6)

    # TODO(synk): the PyTorch module references self.map_dict which is never
    # defined in __init__ (would raise AttributeError there); decoded tags are
    # therefore returned as integer codes, not mapped labels.
    print("KERNEL_OK")
</pallas_src>

<mosaic_0001>
module attributes {stable_mosaic.version = 11 : i64} {
  func.func @_crf_pair_kernel(%arg0: memref<8x32xf32, #tpu.memory_space<vmem>>, %arg1: memref<96x128xf32, #tpu.memory_space<vmem>>, %arg2: memref<8x128xf32, #tpu.memory_space<vmem>>, %arg3: memref<64x8xf32, #tpu.memory_space<vmem>>) attributes {dimension_semantics = [], scalar_prefetch = 0 : i64, scratch_operands = 0 : i64, tpu.core_type = #tpu.core_type<tc>} {
    %c0 = arith.constant 0 : index
    %c0_0 = arith.constant 0 : index
    %0 = vector.load %arg1[%c0, %c0_0] : memref<96x128xf32, #tpu.memory_space<vmem>>, vector<32x16xf32>
    %c32 = arith.constant 32 : index
    %c0_1 = arith.constant 0 : index
    %1 = vector.load %arg1[%c32, %c0_1] : memref<96x128xf32, #tpu.memory_space<vmem>>, vector<1x16xf32>
    %c40 = arith.constant 40 : index
    %c0_2 = arith.constant 0 : index
    %2 = vector.load %arg1[%c40, %c0_2] : memref<96x128xf32, #tpu.memory_space<vmem>>, vector<16x16xf32>
    %c56 = arith.constant 56 : index
    %c0_3 = arith.constant 0 : index
    %3 = vector.load %arg1[%c56, %c0_3] : memref<96x128xf32, #tpu.memory_space<vmem>>, vector<1x16xf32>
    %c64 = arith.constant 64 : index
    %c0_4 = arith.constant 0 : index
    %4 = vector.load %arg1[%c64, %c0_4] : memref<96x128xf32, #tpu.memory_space<vmem>>, vector<16x64xf32>
    %c80 = arith.constant 80 : index
    %c0_5 = arith.constant 0 : index
    %5 = vector.load %arg1[%c80, %c0_5] : memref<96x128xf32, #tpu.memory_space<vmem>>, vector<1x64xf32>
    %c88 = arith.constant 88 : index
    %c0_6 = arith.constant 0 : index
    %6 = vector.load %arg1[%c88, %c0_6] : memref<96x128xf32, #tpu.memory_space<vmem>>, vector<8x8xf32>
    %c0_7 = arith.constant 0 : index
    %c0_8 = arith.constant 0 : index
    %7 = vector.load %arg0[%c0_7, %c0_8] : memref<8x32xf32, #tpu.memory_space<vmem>>, vector<8x32xf32>
    %cst = arith.constant dense<0.000000e+00> : vector<8x16xf32>
    %8 = tpu.matmul %7, %0, %cst {dimension_numbers = #tpu.dot_dimension_numbers<[1], [0], [0], [1], [0, 0, 1, 1], [], []>} : vector<8x32xf32>, vector<32x16xf32>, vector<8x16xf32> -> vector<8x16xf32>
    %9 = vector.broadcast %1 : vector<1x16xf32> to vector<8x16xf32>
    %10 = arith.addf %8, %9 : vector<8x16xf32>
    %cst_9 = arith.constant 0.000000e+00 : f32
    %11 = vector.broadcast %cst_9 : f32 to vector<8x16xf32>
    %12 = arith.maximumf %10, %11 : vector<8x16xf32>
    %cst_10 = arith.constant dense<0.000000e+00> : vector<8x16xf32>
    %13 = tpu.matmul %12, %2, %cst_10 {dimension_numbers = #tpu.dot_dimension_numbers<[1], [0], [0], [1], [0, 0, 1, 1], [], []>} : vector<8x16xf32>, vector<16x16xf32>, vector<8x16xf32> -> vector<8x16xf32>
    %14 = vector.broadcast %3 : vector<1x16xf32> to vector<8x16xf32>
    %15 = arith.addf %13, %14 : vector<8x16xf32>
    %cst_11 = arith.constant 0.000000e+00 : f32
    %16 = vector.broadcast %cst_11 : f32 to vector<8x16xf32>
    %17 = arith.maximumf %15, %16 : vector<8x16xf32>
    %cst_12 = arith.constant dense<0.000000e+00> : vector<8x64xf32>
    %18 = tpu.matmul %17, %4, %cst_12 {dimension_numbers = #tpu.dot_dimension_numbers<[1], [0], [0], [1], [0, 0, 1, 1], [], []>} : vector<8x16xf32>, vector<16x64xf32>, vector<8x64xf32> -> vector<8x64xf32>
    %19 = vector.broadcast %5 : vector<1x64xf32> to vector<8x64xf32>
    %20 = arith.addf %18, %19 : vector<8x64xf32>
    %21 = tpu.iota {dimensions = array<i32: 0>} : vector<64x8xi32>
    %22 = tpu.iota {dimensions = array<i32: 1>} : vector<64x8xi32>
    %cst_13 = arith.constant 0.000000e+00 : f32
    %23 = vector.broadcast %cst_13 : f32 to vector<64x8xf32>
    %c8_i32 = arith.constant 8 : i32
    %24 = vector.broadcast %c8_i32 : i32 to vector<64x8xi32>
    %25 = arith.muli %22, %24 : vector<64x8xi32>
    %c0_i32 = arith.constant 0 : i32
    %26 = vector.broadcast %c0_i32 : i32 to vector<64x8xi32>
    %27 = arith.addi %25, %26 : vector<64x8xi32>
    %28 = arith.cmpi eq, %21, %27 : vector<64x8xi32>
    %29 = arith.extui %28 : vector<64x8xi1> to vector<64x8xi32>
    %30 = arith.sitofp %29 : vector<64x8xi32> to vector<64x8xf32>
    %31 = vector.extract_strided_slice %20 {offsets = [0, 0], sizes = [8, 8], strides = [1, 1]} : vector<8x64xf32> to vector<8x8xf32>
    %cst_14 = arith.constant dense<0.000000e+00> : vector<64x8xf32>
    %32 = tpu.matmul %30, %31, %cst_14 {dimension_numbers = #tpu.dot_dimension_numbers<[1], [0], [0], [1], [0, 0, 1, 1], [], []>} : vector<64x8xf32>, vector<8x8xf32>, vector<64x8xf32> -> vector<64x8xf32>
    %33 = arith.addf %23, %32 : vector<64x8xf32>
    %c8_i32_15 = arith.constant 8 : i32
    %34 = vector.broadcast %c8_i32_15 : i32 to vector<64x8xi32>
    %35 = arith.muli %22, %34 : vector<64x8xi32>
    %c1_i32 = arith.constant 1 : i32
    %36 = vector.broadcast %c1_i32 : i32 to vector<64x8xi32>
    %37 = arith.addi %35, %36 : vector<64x8xi32>
    %38 = arith.cmpi eq, %21, %37 : vector<64x8xi32>
    %39 = arith.extui %38 : vector<64x8xi1> to vector<64x8xi32>
    %40 = arith.sitofp %39 : vector<64x8xi32> to vector<64x8xf32>
    %41 = vector.extract_strided_slice %20 {offsets = [0, 8], sizes = [8, 8], strides = [1, 1]} : vector<8x64xf32> to vector<8x8xf32>
    %cst_16 = arith.constant dense<0.000000e+00> : vector<64x8xf32>
    %42 = tpu.matmul %40, %41, %cst_16 {dimension_numbers = #tpu.dot_dimension_numbers<[1], [0], [0], [1], [0, 0, 1, 1], [], []>} : vector<64x8xf32>, vector<8x8xf32>, vector<64x8xf32> -> vector<64x8xf32>
    %43 = arith.addf %33, %42 : vector<64x8xf32>
    %c8_i32_17 = arith.constant 8 : i32
    %44 = vector.broadcast %c8_i32_17 : i32 to vector<64x8xi32>
    %45 = arith.muli %22, %44 : vector<64x8xi32>
    %c2_i32 = arith.constant 2 : i32
    %46 = vector.broadcast %c2_i32 : i32 to vector<64x8xi32>
    %47 = arith.addi %45, %46 : vector<64x8xi32>
    %48 = arith.cmpi eq, %21, %47 : vector<64x8xi32>
    %49 = arith.extui %48 : vector<64x8xi1> to vector<64x8xi32>
    %50 = arith.sitofp %49 : vector<64x8xi32> to vector<64x8xf32>
    %51 = vector.extract_strided_slice %20 {offsets = [0, 16], sizes = [8, 8], strides = [1, 1]} : vector<8x64xf32> to vector<8x8xf32>
    %cst_18 = arith.constant dense<0.000000e+00> : vector<64x8xf32>
    %52 = tpu.matmul %50, %51, %cst_18 {dimension_numbers = #tpu.dot_dimension_numbers<[1], [0], [0], [1], [0, 0, 1, 1], [], []>} : vector<64x8xf32>, vector<8x8xf32>, vector<64x8xf32> -> vector<64x8xf32>
    %53 = arith.addf %43, %52 : vector<64x8xf32>
    %c8_i32_19 = arith.constant 8 : i32
    %54 = vector.broadcast %c8_i32_19 : i32 to vector<64x8xi32>
    %55 = arith.muli %22, %54 : vector<64x8xi32>
    %c3_i32 = arith.constant 3 : i32
    %56 = vector.broadcast %c3_i32 : i32 to vector<64x8xi32>
    %57 = arith.addi %55, %56 : vector<64x8xi32>
    %58 = arith.cmpi eq, %21, %57 : vector<64x8xi32>
    %59 = arith.extui %58 : vector<64x8xi1> to vector<64x8xi32>
    %60 = arith.sitofp %59 : vector<64x8xi32> to vector<64x8xf32>
    %61 = vector.extract_strided_slice %20 {offsets = [0, 24], sizes = [8, 8], strides = [1, 1]} : vector<8x64xf32> to vector<8x8xf32>
    %cst_20 = arith.constant dense<0.000000e+00> : vector<64x8xf32>
    %62 = tpu.matmul %60, %61, %cst_20 {dimension_numbers = #tpu.dot_dimension_numbers<[1], [0], [0], [1], [0, 0, 1, 1], [], []>} : vector<64x8xf32>, vector<8x8xf32>, vector<64x8xf32> -> vector<64x8xf32>
    %63 = arith.addf %53, %62 : vector<64x8xf32>
    %c8_i32_21 = arith.constant 8 : i32
    %64 = vector.broadcast %c8_i32_21 : i32 to vector<64x8xi32>
    %65 = arith.muli %22, %64 : vector<64x8xi32>
    %c4_i32 = arith.constant 4 : i32
    %66 = vector.broadcast %c4_i32 : i32 to vector<64x8xi32>
    %67 = arith.addi %65, %66 : vector<64x8xi32>
    %68 = arith.cmpi eq, %21, %67 : vector<64x8xi32>
    %69 = arith.extui %68 : vector<64x8xi1> to vector<64x8xi32>
    %70 = arith.sitofp %69 : vector<64x8xi32> to vector<64x8xf32>
    %71 = vector.extract_strided_slice %20 {offsets = [0, 32], sizes = [8, 8], strides = [1, 1]} : vector<8x64xf32> to vector<8x8xf32>
    %cst_22 = arith.constant dense<0.000000e+00> : vector<64x8xf32>
    %72 = tpu.matmul %70, %71, %cst_22 {dimension_numbers = #tpu.dot_dimension_numbers<[1], [0], [0], [1], [0, 0, 1, 1], [], []>} : vector<64x8xf32>, vector<8x8xf32>, vector<64x8xf32> -> vector<64x8xf32>
    %73 = arith.addf %63, %72 : vector<64x8xf32>
    %c8_i32_23 = arith.constant 8 : i32
    %74 = vector.broadcast %c8_i32_23 : i32 to vector<64x8xi32>
    %75 = arith.muli %22, %74 : vector<64x8xi32>
    %c5_i32 = arith.constant 5 : i32
    %76 = vector.broadcast %c5_i32 : i32 to vector<64x8xi32>
    %77 = arith.addi %75, %76 : vector<64x8xi32>
    %78 = arith.cmpi eq, %21, %77 : vector<64x8xi32>
    %79 = arith.extui %78 : vector<64x8xi1> to vector<64x8xi32>
    %80 = arith.sitofp %79 : vector<64x8xi32> to vector<64x8xf32>
    %81 = vector.extract_strided_slice %20 {offsets = [0, 40], sizes = [8, 8], strides = [1, 1]} : vector<8x64xf32> to vector<8x8xf32>
    %cst_24 = arith.constant dense<0.000000e+00> : vector<64x8xf32>
    %82 = tpu.matmul %80, %81, %cst_24 {dimension_numbers = #tpu.dot_dimension_numbers<[1], [0], [0], [1], [0, 0, 1, 1], [], []>} : vector<64x8xf32>, vector<8x8xf32>, vector<64x8xf32> -> vector<64x8xf32>
    %83 = arith.addf %73, %82 : vector<64x8xf32>
    %c8_i32_25 = arith.constant 8 : i32
    %84 = vector.broadcast %c8_i32_25 : i32 to vector<64x8xi32>
    %85 = arith.muli %22, %84 : vector<64x8xi32>
    %c6_i32 = arith.constant 6 : i32
    %86 = vector.broadcast %c6_i32 : i32 to vector<64x8xi32>
    %87 = arith.addi %85, %86 : vector<64x8xi32>
    %88 = arith.cmpi eq, %21, %87 : vector<64x8xi32>
    %89 = arith.extui %88 : vector<64x8xi1> to vector<64x8xi32>
    %90 = arith.sitofp %89 : vector<64x8xi32> to vector<64x8xf32>
    %91 = vector.extract_strided_slice %20 {offsets = [0, 48], sizes = [8, 8], strides = [1, 1]} : vector<8x64xf32> to vector<8x8xf32>
    %cst_26 = arith.constant dense<0.000000e+00> : vector<64x8xf32>
    %92 = tpu.matmul %90, %91, %cst_26 {dimension_numbers = #tpu.dot_dimension_numbers<[1], [0], [0], [1], [0, 0, 1, 1], [], []>} : vector<64x8xf32>, vector<8x8xf32>, vector<64x8xf32> -> vector<64x8xf32>
    %93 = arith.addf %83, %92 : vector<64x8xf32>
    %c8_i32_27 = arith.constant 8 : i32
    %94 = vector.broadcast %c8_i32_27 : i32 to vector<64x8xi32>
    %95 = arith.muli %22, %94 : vector<64x8xi32>
    %c7_i32 = arith.constant 7 : i32
    %96 = vector.broadcast %c7_i32 : i32 to vector<64x8xi32>
    %97 = arith.addi %95, %96 : vector<64x8xi32>
    %98 = arith.cmpi eq, %21, %97 : vector<64x8xi32>
    %99 = arith.extui %98 : vector<64x8xi1> to vector<64x8xi32>
    %100 = arith.sitofp %99 : vector<64x8xi32> to vector<64x8xf32>
    %101 = vector.extract_strided_slice %20 {offsets = [0, 56], sizes = [8, 8], strides = [1, 1]} : vector<8x64xf32> to vector<8x8xf32>
    %cst_28 = arith.constant dense<0.000000e+00> : vector<64x8xf32>
    %102 = tpu.matmul %100, %101, %cst_28 {dimension_numbers = #tpu.dot_dimension_numbers<[1], [0], [0], [1], [0, 0, 1, 1], [], []>} : vector<64x8xf32>, vector<8x8xf32>, vector<64x8xf32> -> vector<64x8xf32>
    %103 = arith.addf %93, %102 : vector<64x8xf32>
    %c0_29 = arith.constant 0 : index
    %c0_30 = arith.constant 0 : index
    %104 = vector.load %arg3[%c0_29, %c0_30] : memref<64x8xf32, #tpu.memory_space<vmem>>, vector<64x8xf32>
    tpu.vector_store %arg3[%c0_29, %c0_30], %103 {strides = array<i32>} : memref<64x8xf32, #tpu.memory_space<vmem>>, vector<64x8xf32>,
    %105 = tpu.iota {dimensions = array<i32: 1>} : vector<1x8xi32>
    %106 = tpu.iota {dimensions = array<i32: 0>} : vector<8x1xi32>
    %107 = tpu.iota {dimensions = array<i32: 0>} : vector<8x1xi32>
    %108 = tpu.iota {dimensions = array<i32: 0>} : vector<8x8xi32>
    %c0_i32_31 = arith.constant 0 : i32
    %109 = vector.broadcast %c0_i32_31 : i32 to vector<8x1xi32>
    %110 = arith.cmpi eq, %106, %109 : vector<8x1xi32>
    %cst_32 = arith.constant 0.000000e+00 : f32
    %cst_33 = arith.constant -1.000000e+05 : f32
    %111 = vector.broadcast %cst_32 : f32 to vector<8x1xf32>
    %112 = vector.broadcast %cst_33 : f32 to vector<8x1xf32>
    %113 = arith.select %110, %111, %112 : vector<8x1xi1>, vector<8x1xf32>
    %cst_34 = arith.constant 0.000000e+00 : f32
    %114 = vector.broadcast %cst_34 : f32 to vector<8x8xf32>
    %115 = vector.extract_strided_slice %103 {offsets = [0, 0], sizes = [8, 8], strides = [1, 1]} : vector<64x8xf32> to vector<8x8xf32>
    %116 = arith.addf %115, %6 : vector<8x8xf32>
    %117 = vector.broadcast %113 : vector<8x1xf32> to vector<8x8xf32>
    %118 = arith.addf %117, %116 : vector<8x8xf32>
    %cst_35 = arith.constant dense<0xFF800000> : vector<8xf32>
    %119 = vector.multi_reduction <maximumf>, %118, %cst_35 [0] : vector<8x8xf32> to vector<8xf32>
    %120 = vector.shape_cast %119 : vector<8xf32> to vector<1x8xf32>
    %c0_i32_36 = arith.constant 0 : i32
    %121 = vector.broadcast %c0_i32_36 : i32 to vector<8x1xi32>
    %122 = arith.cmpi eq, %107, %121 : vector<8x1xi32>
    %123 = vector.shape_cast %122 : vector<8x1xi1> to vector<8x1xi1>
    %124 = vector.broadcast %123 : vector<8x1xi1> to vector<8x8xi1>
    %125 = vector.shape_cast %120 : vector<1x8xf32> to vector<1x8xf32>
    %126 = vector.broadcast %125 : vector<1x8xf32> to vector<8x8xf32>
    %127 = arith.select %124, %126, %114 : vector<8x8xi1>, vector<8x8xf32>
    %128 = tpu.transpose %120, [1, 0] : vector<1x8xf32> -> vector<8x1xf32>
    %129 = vector.extract_strided_slice %103 {offsets = [8, 0], sizes = [8, 8], strides = [1, 1]} : vector<64x8xf32> to vector<8x8xf32>
    %130 = arith.addf %129, %6 : vector<8x8xf32>
    %131 = vector.broadcast %128 : vector<8x1xf32> to vector<8x8xf32>
    %132 = arith.addf %131, %130 : vector<8x8xf32>
    %cst_37 = arith.constant dense<0xFF800000> : vector<8xf32>
    %133 = vector.multi_reduction <maximumf>, %132, %cst_37 [0] : vector<8x8xf32> to vector<8xf32>
    %134 = vector.shape_cast %133 : vector<8xf32> to vector<1x8xf32>
    %135 = vector.broadcast %134 : vector<1x8xf32> to vector<8x8xf32>
    %136 = arith.cmpf oeq, %132, %135 : vector<8x8xf32>
    %c8_i32_38 = arith.constant 8 : i32
    %137 = vector.broadcast %c8_i32_38 : i32 to vector<8x8xi32>
    %138 = arith.select %136, %108, %137 : vector<8x8xi1>, vector<8x8xi32>
    %cst_39 = arith.constant dense<2147483647> : vector<8xi32>
    %139 = vector.multi_reduction <minsi>, %138, %cst_39 [0] : vector<8x8xi32> to vector<8xi32>
    %140 = vector.shape_cast %139 : vector<8xi32> to vector<1x8xi32>
    %c1_i32_40 = arith.constant 1 : i32
    %141 = vector.broadcast %c1_i32_40 : i32 to vector<8x1xi32>
    %142 = arith.cmpi eq, %107, %141 : vector<8x1xi32>
    %143 = vector.shape_cast %142 : vector<8x1xi1> to vector<8x1xi1>
    %144 = vector.broadcast %143 : vector<8x1xi1> to vector<8x8xi1>
    %145 = vector.shape_cast %134 : vector<1x8xf32> to vector<1x8xf32>
    %146 = vector.broadcast %145 : vector<1x8xf32> to vector<8x8xf32>
    %147 = arith.select %144, %146, %127 : vector<8x8xi1>, vector<8x8xf32>
    %148 = tpu.transpose %134, [1, 0] : vector<1x8xf32> -> vector<8x1xf32>
    %149 = vector.extract_strided_slice %103 {offsets = [16, 0], sizes = [8, 8], strides = [1, 1]} : vector<64x8xf32> to vector<8x8xf32>
    %150 = arith.addf %149, %6 : vector<8x8xf32>
    %151 = vector.broadcast %148 : vector<8x1xf32> to vector<8x8xf32>
    %152 = arith.addf %151, %150 : vector<8x8xf32>
    %cst_41 = arith.constant dense<0xFF800000> : vector<8xf32>
    %153 = vector.multi_reduction <maximumf>, %152, %cst_41 [0] : vector<8x8xf32> to vector<8xf32>
    %154 = vector.shape_cast %153 : vector<8xf32> to vector<1x8xf32>
    %155 = vector.broadcast %154 : vector<1x8xf32> to vector<8x8xf32>
    %156 = arith.cmpf oeq, %152, %155 : vector<8x8xf32>
    %c8_i32_42 = arith.constant 8 : i32
    %157 = vector.broadcast %c8_i32_42 : i32 to vector<8x8xi32>
    %158 = arith.select %156, %108, %157 : vector<8x8xi1>, vector<8x8xi32>
    %cst_43 = arith.constant dense<2147483647> : vector<8xi32>
    %159 = vector.multi_reduction <minsi>, %158, %cst_43 [0] : vector<8x8xi32> to vector<8xi32>
    %160 = vector.shape_cast %159 : vector<8xi32> to vector<1x8xi32>
    %c2_i32_44 = arith.constant 2 : i32
    %161 = vector.broadcast %c2_i32_44 : i32 to vector<8x1xi32>
    %162 = arith.cmpi eq, %107, %161 : vector<8x1xi32>
    %163 = vector.shape_cast %162 : vector<8x1xi1> to vector<8x1xi1>
    %164 = vector.broadcast %163 : vector<8x1xi1> to vector<8x8xi1>
    %165 = vector.shape_cast %154 : vector<1x8xf32> to vector<1x8xf32>
    %166 = vector.broadcast %165 : vector<1x8xf32> to vector<8x8xf32>
    %167 = arith.select %164, %166, %147 : vector<8x8xi1>, vector<8x8xf32>
    %168 = tpu.transpose %154, [1, 0] : vector<1x8xf32> -> vector<8x1xf32>
    %169 = vector.extract_strided_slice %103 {offsets = [24, 0], sizes = [8, 8], strides = [1, 1]} : vector<64x8xf32> to vector<8x8xf32>
    %170 = arith.addf %169, %6 : vector<8x8xf32>
    %171 = vector.broadcast %168 : vector<8x1xf32> to vector<8x8xf32>
    %172 = arith.addf %171, %170 : vector<8x8xf32>
    %cst_45 = arith.constant dense<0xFF800000> : vector<8xf32>
    %173 = vector.multi_reduction <maximumf>, %172, %cst_45 [0] : vector<8x8xf32> to vector<8xf32>
    %174 = vector.shape_cast %173 : vector<8xf32> to vector<1x8xf32>
    %175 = vector.broadcast %174 : vector<1x8xf32> to vector<8x8xf32>
    %176 = arith.cmpf oeq, %172, %175 : vector<8x8xf32>
    %c8_i32_46 = arith.constant 8 : i32
    %177 = vector.broadcast %c8_i32_46 : i32 to vector<8x8xi32>
    %178 = arith.select %176, %108, %177 : vector<8x8xi1>, vector<8x8xi32>
    %cst_47 = arith.constant dense<2147483647> : vector<8xi32>
    %179 = vector.multi_reduction <minsi>, %178, %cst_47 [0] : vector<8x8xi32> to vector<8xi32>
    %180 = vector.shape_cast %179 : vector<8xi32> to vector<1x8xi32>
    %c3_i32_48 = arith.constant 3 : i32
    %181 = vector.broadcast %c3_i32_48 : i32 to vector<8x1xi32>
    %182 = arith.cmpi eq, %107, %181 : vector<8x1xi32>
    %183 = vector.shape_cast %182 : vector<8x1xi1> to vector<8x1xi1>
    %184 = vector.broadcast %183 : vector<8x1xi1> to vector<8x8xi1>
    %185 = vector.shape_cast %174 : vector<1x8xf32> to vector<1x8xf32>
    %186 = vector.broadcast %185 : vector<1x8xf32> to vector<8x8xf32>
    %187 = arith.select %184, %186, %167 : vector<8x8xi1>, vector<8x8xf32>
    %188 = tpu.transpose %174, [1, 0] : vector<1x8xf32> -> vector<8x1xf32>
    %189 = vector.extract_strided_slice %103 {offsets = [32, 0], sizes = [8, 8], strides = [1, 1]} : vector<64x8xf32> to vector<8x8xf32>
    %190 = arith.addf %189, %6 : vector<8x8xf32>
    %191 = vector.broadcast %188 : vector<8x1xf32> to vector<8x8xf32>
    %192 = arith.addf %191, %190 : vector<8x8xf32>
    %cst_49 = arith.constant dense<0xFF800000> : vector<8xf32>
    %193 = vector.multi_reduction <maximumf>, %192, %cst_49 [0] : vector<8x8xf32> to vector<8xf32>
    %194 = vector.shape_cast %193 : vector<8xf32> to vector<1x8xf32>
    %195 = vector.broadcast %194 : vector<1x8xf32> to vector<8x8xf32>
    %196 = arith.cmpf oeq, %192, %195 : vector<8x8xf32>
    %c8_i32_50 = arith.constant 8 : i32
    %197 = vector.broadcast %c8_i32_50 : i32 to vector<8x8xi32>
    %198 = arith.select %196, %108, %197 : vector<8x8xi1>, vector<8x8xi32>
    %cst_51 = arith.constant dense<2147483647> : vector<8xi32>
    %199 = vector.multi_reduction <minsi>, %198, %cst_51 [0] : vector<8x8xi32> to vector<8xi32>
    %200 = vector.shape_cast %199 : vector<8xi32> to vector<1x8xi32>
    %c4_i32_52 = arith.constant 4 : i32
    %201 = vector.broadcast %c4_i32_52 : i32 to vector<8x1xi32>
    %202 = arith.cmpi eq, %107, %201 : vector<8x1xi32>
    %203 = vector.shape_cast %202 : vector<8x1xi1> to vector<8x1xi1>
    %204 = vector.broadcast %203 : vector<8x1xi1> to vector<8x8xi1>
    %205 = vector.shape_cast %194 : vector<1x8xf32> to vector<1x8xf32>
    %206 = vector.broadcast %205 : vector<1x8xf32> to vector<8x8xf32>
    %207 = arith.select %204, %206, %187 : vector<8x8xi1>, vector<8x8xf32>
    %208 = tpu.transpose %194, [1, 0] : vector<1x8xf32> -> vector<8x1xf32>
    %209 = vector.extract_strided_slice %103 {offsets = [40, 0], sizes = [8, 8], strides = [1, 1]} : vector<64x8xf32> to vector<8x8xf32>
    %210 = arith.addf %209, %6 : vector<8x8xf32>
    %211 = vector.broadcast %208 : vector<8x1xf32> to vector<8x8xf32>
    %212 = arith.addf %211, %210 : vector<8x8xf32>
    %cst_53 = arith.constant dense<0xFF800000> : vector<8xf32>
    %213 = vector.multi_reduction <maximumf>, %212, %cst_53 [0] : vector<8x8xf32> to vector<8xf32>
    %214 = vector.shape_cast %213 : vector<8xf32> to vector<1x8xf32>
    %215 = vector.broadcast %214 : vector<1x8xf32> to vector<8x8xf32>
    %216 = arith.cmpf oeq, %212, %215 : vector<8x8xf32>
    %c8_i32_54 = arith.constant 8 : i32
    %217 = vector.broadcast %c8_i32_54 : i32 to vector<8x8xi32>
    %218 = arith.select %216, %108, %217 : vector<8x8xi1>, vector<8x8xi32>
    %cst_55 = arith.constant dense<2147483647> : vector<8xi32>
    %219 = vector.multi_reduction <minsi>, %218, %cst_55 [0] : vector<8x8xi32> to vector<8xi32>
    %220 = vector.shape_cast %219 : vector<8xi32> to vector<1x8xi32>
    %c5_i32_56 = arith.constant 5 : i32
    %221 = vector.broadcast %c5_i32_56 : i32 to vector<8x1xi32>
    %222 = arith.cmpi eq, %107, %221 : vector<8x1xi32>
    %223 = vector.shape_cast %222 : vector<8x1xi1> to vector<8x1xi1>
    %224 = vector.broadcast %223 : vector<8x1xi1> to vector<8x8xi1>
    %225 = vector.shape_cast %214 : vector<1x8xf32> to vector<1x8xf32>
    %226 = vector.broadcast %225 : vector<1x8xf32> to vector<8x8xf32>
    %227 = arith.select %224, %226, %207 : vector<8x8xi1>, vector<8x8xf32>
    %228 = tpu.transpose %214, [1, 0] : vector<1x8xf32> -> vector<8x1xf32>
    %229 = vector.extract_strided_slice %103 {offsets = [48, 0], sizes = [8, 8], strides = [1, 1]} : vector<64x8xf32> to vector<8x8xf32>
    %230 = arith.addf %229, %6 : vector<8x8xf32>
    %231 = vector.broadcast %228 : vector<8x1xf32> to vector<8x8xf32>
    %232 = arith.addf %231, %230 : vector<8x8xf32>
    %cst_57 = arith.constant dense<0xFF800000> : vector<8xf32>
    %233 = vector.multi_reduction <maximumf>, %232, %cst_57 [0] : vector<8x8xf32> to vector<8xf32>
    %234 = vector.shape_cast %233 : vector<8xf32> to vector<1x8xf32>
    %235 = vector.broadcast %234 : vector<1x8xf32> to vector<8x8xf32>
    %236 = arith.cmpf oeq, %232, %235 : vector<8x8xf32>
    %c8_i32_58 = arith.constant 8 : i32
    %237 = vector.broadcast %c8_i32_58 : i32 to vector<8x8xi32>
    %238 = arith.select %236, %108, %237 : vector<8x8xi1>, vector<8x8xi32>
    %cst_59 = arith.constant dense<2147483647> : vector<8xi32>
    %239 = vector.multi_reduction <minsi>, %238, %cst_59 [0] : vector<8x8xi32> to vector<8xi32>
    %240 = vector.shape_cast %239 : vector<8xi32> to vector<1x8xi32>
    %c6_i32_60 = arith.constant 6 : i32
    %241 = vector.broadcast %c6_i32_60 : i32 to vector<8x1xi32>
    %242 = arith.cmpi eq, %107, %241 : vector<8x1xi32>
    %243 = vector.shape_cast %242 : vector<8x1xi1> to vector<8x1xi1>
    %244 = vector.broadcast %243 : vector<8x1xi1> to vector<8x8xi1>
    %245 = vector.shape_cast %234 : vector<1x8xf32> to vector<1x8xf32>
    %246 = vector.broadcast %245 : vector<1x8xf32> to vector<8x8xf32>
    %247 = arith.select %244, %246, %227 : vector<8x8xi1>, vector<8x8xf32>
    %248 = tpu.transpose %234, [1, 0] : vector<1x8xf32> -> vector<8x1xf32>
    %249 = vector.extract_strided_slice %103 {offsets = [56, 0], sizes = [8, 8], strides = [1, 1]} : vector<64x8xf32> to vector<8x8xf32>
    %250 = arith.addf %249, %6 : vector<8x8xf32>
    %251 = vector.broadcast %248 : vector<8x1xf32> to vector<8x8xf32>
    %252 = arith.addf %251, %250 : vector<8x8xf32>
    %cst_61 = arith.constant dense<0xFF800000> : vector<8xf32>
    %253 = vector.multi_reduction <maximumf>, %252, %cst_61 [0] : vector<8x8xf32> to vector<8xf32>
    %254 = vector.shape_cast %253 : vector<8xf32> to vector<1x8xf32>
    %255 = vector.broadcast %254 : vector<1x8xf32> to vector<8x8xf32>
    %256 = arith.cmpf oeq, %252, %255 : vector<8x8xf32>
    %c8_i32_62 = arith.constant 8 : i32
    %257 = vector.broadcast %c8_i32_62 : i32 to vector<8x8xi32>
    %258 = arith.select %256, %108, %257 : vector<8x8xi1>, vector<8x8xi32>
    %cst_63 = arith.constant dense<2147483647> : vector<8xi32>
    %259 = vector.multi_reduction <minsi>, %258, %cst_63 [0] : vector<8x8xi32> to vector<8xi32>
    %260 = vector.shape_cast %259 : vector<8xi32> to vector<1x8xi32>
    %c7_i32_64 = arith.constant 7 : i32
    %261 = vector.broadcast %c7_i32_64 : i32 to vector<8x1xi32>
    %262 = arith.cmpi eq, %107, %261 : vector<8x1xi32>
    %263 = vector.shape_cast %262 : vector<8x1xi1> to vector<8x1xi1>
    %264 = vector.broadcast %263 : vector<8x1xi1> to vector<8x8xi1>
    %265 = vector.shape_cast %254 : vector<1x8xf32> to vector<1x8xf32>
    %266 = vector.broadcast %265 : vector<1x8xf32> to vector<8x8xf32>
    %267 = arith.select %264, %266, %247 : vector<8x8xi1>, vector<8x8xf32>
    %cst_65 = arith.constant dense<0xFF800000> : vector<1xf32>
    %268 = vector.multi_reduction <maximumf>, %254, %cst_65 [1] : vector<1x8xf32> to vector<1xf32>
    %269 = vector.shape_cast %268 : vector<1xf32> to vector<1x1xf32>
    %270 = vector.broadcast %269 : vector<1x1xf32> to vector<1x8xf32>
    %271 = arith.cmpf oeq, %254, %270 : vector<1x8xf32>
    %272 = arith.sitofp %105 : vector<1x8xi32> to vector<1x8xf32>
    %cst_66 = arith.constant 8.000000e+00 : f32
    %273 = vector.broadcast %cst_66 : f32 to vector<1x8xf32>
    %274 = arith.select %271, %272, %273 : vector<1x8xi1>, vector<1x8xf32>
    %cst_67 = arith.constant dense<0x7F800000> : vector<1xf32>
    %275 = vector.multi_reduction <minimumf>, %274, %cst_67 [1] : vector<1x8xf32> to vector<1xf32>
    %276 = vector.shape_cast %275 : vector<1xf32> to vector<1x1xf32>
    %277 = arith.fptosi %276 : vector<1x1xf32> to vector<1x1xi32>
    %c7_i32_68 = arith.constant 7 : i32
    %278 = vector.broadcast %c7_i32_68 : i32 to vector<8x1xi32>
    %279 = arith.cmpi eq, %107, %278 : vector<8x1xi32>
    %280 = arith.sitofp %277 : vector<1x1xi32> to vector<1x1xf32>
    %cst_69 = arith.constant 0.000000e+00 : f32
    %281 = vector.shape_cast %280 : vector<1x1xf32> to vector<1x1xf32>
    %282 = vector.broadcast %281 : vector<1x1xf32> to vector<8x1xf32>
    %283 = vector.broadcast %cst_69 : f32 to vector<8x1xf32>
    %284 = arith.select %279, %282, %283 : vector<8x1xi1>, vector<8x1xf32>
    %c7_i32_70 = arith.constant 7 : i32
    %285 = vector.broadcast %c7_i32_70 : i32 to vector<8x1xi32>
    %286 = arith.cmpi eq, %107, %285 : vector<8x1xi32>
    %cst_71 = arith.constant 0.000000e+00 : f32
    %287 = vector.shape_cast %269 : vector<1x1xf32> to vector<1x1xf32>
    %288 = vector.broadcast %287 : vector<1x1xf32> to vector<8x1xf32>
    %289 = vector.broadcast %cst_71 : f32 to vector<8x1xf32>
    %290 = arith.select %286, %288, %289 : vector<8x1xi1>, vector<8x1xf32>
    %291 = vector.broadcast %277 : vector<1x1xi32> to vector<1x8xi32>
    %292 = arith.cmpi eq, %105, %291 : vector<1x8xi32>
    %293 = arith.sitofp %260 : vector<1x8xi32> to vector<1x8xf32>
    %cst_72 = arith.constant 0.000000e+00 : f32
    %294 = vector.broadcast %cst_72 : f32 to vector<1x8xf32>
    %295 = arith.select %292, %293, %294 : vector<1x8xi1>, vector<1x8xf32>
    %cst_73 = arith.constant dense<0.000000e+00> : vector<1xf32>
    %296 = vector.multi_reduction <add>, %295, %cst_73 [1] : vector<1x8xf32> to vector<1xf32>
    %297 = vector.shape_cast %296 : vector<1xf32> to vector<1x1xf32>
    %298 = arith.fptosi %297 : vector<1x1xf32> to vector<1x1xi32>
    %299 = vector.broadcast %298 : vector<1x1xi32> to vector<1x8xi32>
    %300 = arith.cmpi eq, %105, %299 : vector<1x8xi32>
    %cst_74 = arith.constant 0.000000e+00 : f32
    %301 = vector.broadcast %cst_74 : f32 to vector<1x8xf32>
    %302 = arith.select %300, %234, %301 : vector<1x8xi1>, vector<1x8xf32>
    %cst_75 = arith.constant dense<0.000000e+00> : vector<1xf32>
    %303 = vector.multi_reduction <add>, %302, %cst_75 [1] : vector<1x8xf32> to vector<1xf32>
    %304 = vector.shape_cast %303 : vector<1xf32> to vector<1x1xf32>
    %c6_i32_76 = arith.constant 6 : i32
    %305 = vector.broadcast %c6_i32_76 : i32 to vector<8x1xi32>
    %306 = arith.cmpi eq, %107, %305 : vector<8x1xi32>
    %307 = vector.shape_cast %297 : vector<1x1xf32> to vector<1x1xf32>
    %308 = vector.broadcast %307 : vector<1x1xf32> to vector<8x1xf32>
    %309 = arith.select %306, %308, %284 : vector<8x1xi1>, vector<8x1xf32>
    %c6_i32_77 = arith.constant 6 : i32
    %310 = vector.broadcast %c6_i32_77 : i32 to vector<8x1xi32>
    %311 = arith.cmpi eq, %107, %310 : vector<8x1xi32>
    %312 = vector.shape_cast %304 : vector<1x1xf32> to vector<1x1xf32>
    %313 = vector.broadcast %312 : vector<1x1xf32> to vector<8x1xf32>
    %314 = arith.select %311, %313, %290 : vector<8x1xi1>, vector<8x1xf32>
    %315 = vector.broadcast %298 : vector<1x1xi32> to vector<1x8xi32>
    %316 = arith.cmpi eq, %105, %315 : vector<1x8xi32>
    %317 = arith.sitofp %240 : vector<1x8xi32> to vector<1x8xf32>
    %cst_78 = arith.constant 0.000000e+00 : f32
    %318 = vector.broadcast %cst_78 : f32 to vector<1x8xf32>
    %319 = arith.select %316, %317, %318 : vector<1x8xi1>, vector<1x8xf32>
    %cst_79 = arith.constant dense<0.000000e+00> : vector<1xf32>
    %320 = vector.multi_reduction <add>, %319, %cst_79 [1] : vector<1x8xf32> to vector<1xf32>
    %321 = vector.shape_cast %320 : vector<1xf32> to vector<1x1xf32>
    %322 = arith.fptosi %321 : vector<1x1xf32> to vector<1x1xi32>
    %323 = vector.broadcast %322 : vector<1x1xi32> to vector<1x8xi32>
    %324 = arith.cmpi eq, %105, %323 : vector<1x8xi32>
    %cst_80 = arith.constant 0.000000e+00 : f32
    %325 = vector.broadcast %cst_80 : f32 to vector<1x8xf32>
    %326 = arith.select %324, %214, %325 : vector<1x8xi1>, vector<1x8xf32>
    %cst_81 = arith.constant dense<0.000000e+00> : vector<1xf32>
    %327 = vector.multi_reduction <add>, %326, %cst_81 [1] : vector<1x8xf32> to vector<1xf32>
    %328 = vector.shape_cast %327 : vector<1xf32> to vector<1x1xf32>
    %c5_i32_82 = arith.constant 5 : i32
    %329 = vector.broadcast %c5_i32_82 : i32 to vector<8x1xi32>
    %330 = arith.cmpi eq, %107, %329 : vector<8x1xi32>
    %331 = vector.shape_cast %321 : vector<1x1xf32> to vector<1x1xf32>
    %332 = vector.broadcast %331 : vector<1x1xf32> to vector<8x1xf32>
    %333 = arith.select %330, %332, %309 : vector<8x1xi1>, vector<8x1xf32>
    %c5_i32_83 = arith.constant 5 : i32
    %334 = vector.broadcast %c5_i32_83 : i32 to vector<8x1xi32>
    %335 = arith.cmpi eq, %107, %334 : vector<8x1xi32>
    %336 = vector.shape_cast %328 : vector<1x1xf32> to vector<1x1xf32>
    %337 = vector.broadcast %336 : vector<1x1xf32> to vector<8x1xf32>
    %338 = arith.select %335, %337, %314 : vector<8x1xi1>, vector<8x1xf32>
    %339 = vector.broadcast %322 : vector<1x1xi32> to vector<1x8xi32>
    %340 = arith.cmpi eq, %105, %339 : vector<1x8xi32>
    %341 = arith.sitofp %220 : vector<1x8xi32> to vector<1x8xf32>
    %cst_84 = arith.constant 0.000000e+00 : f32
    %342 = vector.broadcast %cst_84 : f32 to vector<1x8xf32>
    %343 = arith.select %340, %341, %342 : vector<1x8xi1>, vector<1x8xf32>
    %cst_85 = arith.constant dense<0.000000e+00> : vector<1xf32>
    %344 = vector.multi_reduction <add>, %343, %cst_85 [1] : vector<1x8xf32> to vector<1xf32>
    %345 = vector.shape_cast %344 : vector<1xf32> to vector<1x1xf32>
    %346 = arith.fptosi %345 : vector<1x1xf32> to vector<1x1xi32>
    %347 = vector.broadcast %346 : vector<1x1xi32> to vector<1x8xi32>
    %348 = arith.cmpi eq, %105, %347 : vector<1x8xi32>
    %cst_86 = arith.constant 0.000000e+00 : f32
    %349 = vector.broadcast %cst_86 : f32 to vector<1x8xf32>
    %350 = arith.select %348, %194, %349 : vector<1x8xi1>, vector<1x8xf32>
    %cst_87 = arith.constant dense<0.000000e+00> : vector<1xf32>
    %351 = vector.multi_reduction <add>, %350, %cst_87 [1] : vector<1x8xf32> to vector<1xf32>
    %352 = vector.shape_cast %351 : vector<1xf32> to vector<1x1xf32>
    %c4_i32_88 = arith.constant 4 : i32
    %353 = vector.broadcast %c4_i32_88 : i32 to vector<8x1xi32>
    %354 = arith.cmpi eq, %107, %353 : vector<8x1xi32>
    %355 = vector.shape_cast %345 : vector<1x1xf32> to vector<1x1xf32>
    %356 = vector.broadcast %355 : vector<1x1xf32> to vector<8x1xf32>
    %357 = arith.select %354, %356, %333 : vector<8x1xi1>, vector<8x1xf32>
    %c4_i32_89 = arith.constant 4 : i32
    %358 = vector.broadcast %c4_i32_89 : i32 to vector<8x1xi32>
    %359 = arith.cmpi eq, %107, %358 : vector<8x1xi32>
    %360 = vector.shape_cast %352 : vector<1x1xf32> to vector<1x1xf32>
    %361 = vector.broadcast %360 : vector<1x1xf32> to vector<8x1xf32>
    %362 = arith.select %359, %361, %338 : vector<8x1xi1>, vector<8x1xf32>
    %363 = vector.broadcast %346 : vector<1x1xi32> to vector<1x8xi32>
    %364 = arith.cmpi eq, %105, %363 : vector<1x8xi32>
    %365 = arith.sitofp %200 : vector<1x8xi32> to vector<1x8xf32>
    %cst_90 = arith.constant 0.000000e+00 : f32
    %366 = vector.broadcast %cst_90 : f32 to vector<1x8xf32>
    %367 = arith.select %364, %365, %366 : vector<1x8xi1>, vector<1x8xf32>
    %cst_91 = arith.constant dense<0.000000e+00> : vector<1xf32>
    %368 = vector.multi_reduction <add>, %367, %cst_91 [1] : vector<1x8xf32> to vector<1xf32>
    %369 = vector.shape_cast %368 : vector<1xf32> to vector<1x1xf32>
    %370 = arith.fptosi %369 : vector<1x1xf32> to vector<1x1xi32>
    %371 = vector.broadcast %370 : vector<1x1xi32> to vector<1x8xi32>
    %372 = arith.cmpi eq, %105, %371 : vector<1x8xi32>
    %cst_92 = arith.constant 0.000000e+00 : f32
    %373 = vector.broadcast %cst_92 : f32 to vector<1x8xf32>
    %374 = arith.select %372, %174, %373 : vector<1x8xi1>, vector<1x8xf32>
    %cst_93 = arith.constant dense<0.000000e+00> : vector<1xf32>
    %375 = vector.multi_reduction <add>, %374, %cst_93 [1] : vector<1x8xf32> to vector<1xf32>
    %376 = vector.shape_cast %375 : vector<1xf32> to vector<1x1xf32>
    %c3_i32_94 = arith.constant 3 : i32
    %377 = vector.broadcast %c3_i32_94 : i32 to vector<8x1xi32>
    %378 = arith.cmpi eq, %107, %377 : vector<8x1xi32>
    %379 = vector.shape_cast %369 : vector<1x1xf32> to vector<1x1xf32>
    %380 = vector.broadcast %379 : vector<1x1xf32> to vector<8x1xf32>
    %381 = arith.select %378, %380, %357 : vector<8x1xi1>, vector<8x1xf32>
    %c3_i32_95 = arith.constant 3 : i32
    %382 = vector.broadcast %c3_i32_95 : i32 to vector<8x1xi32>
    %383 = arith.cmpi eq, %107, %382 : vector<8x1xi32>
    %384 = vector.shape_cast %376 : vector<1x1xf32> to vector<1x1xf32>
    %385 = vector.broadcast %384 : vector<1x1xf32> to vector<8x1xf32>
    %386 = arith.select %383, %385, %362 : vector<8x1xi1>, vector<8x1xf32>
    %387 = vector.broadcast %370 : vector<1x1xi32> to vector<1x8xi32>
    %388 = arith.cmpi eq, %105, %387 : vector<1x8xi32>
    %389 = arith.sitofp %180 : vector<1x8xi32> to vector<1x8xf32>
    %cst_96 = arith.constant 0.000000e+00 : f32
    %390 = vector.broadcast %cst_96 : f32 to vector<1x8xf32>
    %391 = arith.select %388, %389, %390 : vector<1x8xi1>, vector<1x8xf32>
    %cst_97 = arith.constant dense<0.000000e+00> : vector<1xf32>
    %392 = vector.multi_reduction <add>, %391, %cst_97 [1] : vector<1x8xf32> to vector<1xf32>
    %393 = vector.shape_cast %392 : vector<1xf32> to vector<1x1xf32>
    %394 = arith.fptosi %393 : vector<1x1xf32> to vector<1x1xi32>
    %395 = vector.broadcast %394 : vector<1x1xi32> to vector<1x8xi32>
    %396 = arith.cmpi eq, %105, %395 : vector<1x8xi32>
    %cst_98 = arith.constant 0.000000e+00 : f32
    %397 = vector.broadcast %cst_98 : f32 to vector<1x8xf32>
    %398 = arith.select %396, %154, %397 : vector<1x8xi1>, vector<1x8xf32>
    %cst_99 = arith.constant dense<0.000000e+00> : vector<1xf32>
    %399 = vector.multi_reduction <add>, %398, %cst_99 [1] : vector<1x8xf32> to vector<1xf32>
    %400 = vector.shape_cast %399 : vector<1xf32> to vector<1x1xf32>
    %c2_i32_100 = arith.constant 2 : i32
    %401 = vector.broadcast %c2_i32_100 : i32 to vector<8x1xi32>
    %402 = arith.cmpi eq, %107, %401 : vector<8x1xi32>
    %403 = vector.shape_cast %393 : vector<1x1xf32> to vector<1x1xf32>
    %404 = vector.broadcast %403 : vector<1x1xf32> to vector<8x1xf32>
    %405 = arith.select %402, %404, %381 : vector<8x1xi1>, vector<8x1xf32>
    %c2_i32_101 = arith.constant 2 : i32
    %406 = vector.broadcast %c2_i32_101 : i32 to vector<8x1xi32>
    %407 = arith.cmpi eq, %107, %406 : vector<8x1xi32>
    %408 = vector.shape_cast %400 : vector<1x1xf32> to vector<1x1xf32>
    %409 = vector.broadcast %408 : vector<1x1xf32> to vector<8x1xf32>
    %410 = arith.select %407, %409, %386 : vector<8x1xi1>, vector<8x1xf32>
    %411 = vector.broadcast %394 : vector<1x1xi32> to vector<1x8xi32>
    %412 = arith.cmpi eq, %105, %411 : vector<1x8xi32>
    %413 = arith.sitofp %160 : vector<1x8xi32> to vector<1x8xf32>
    %cst_102 = arith.constant 0.000000e+00 : f32
    %414 = vector.broadcast %cst_102 : f32 to vector<1x8xf32>
    %415 = arith.select %412, %413, %414 : vector<1x8xi1>, vector<1x8xf32>
    %cst_103 = arith.constant dense<0.000000e+00> : vector<1xf32>
    %416 = vector.multi_reduction <add>, %415, %cst_103 [1] : vector<1x8xf32> to vector<1xf32>
    %417 = vector.shape_cast %416 : vector<1xf32> to vector<1x1xf32>
    %418 = arith.fptosi %417 : vector<1x1xf32> to vector<1x1xi32>
    %419 = vector.broadcast %418 : vector<1x1xi32> to vector<1x8xi32>
    %420 = arith.cmpi eq, %105, %419 : vector<1x8xi32>
    %cst_104 = arith.constant 0.000000e+00 : f32
    %421 = vector.broadcast %cst_104 : f32 to vector<1x8xf32>
    %422 = arith.select %420, %134, %421 : vector<1x8xi1>, vector<1x8xf32>
    %cst_105 = arith.constant dense<0.000000e+00> : vector<1xf32>
    %423 = vector.multi_reduction <add>, %422, %cst_105 [1] : vector<1x8xf32> to vector<1xf32>
    %424 = vector.shape_cast %423 : vector<1xf32> to vector<1x1xf32>
    %c1_i32_106 = arith.constant 1 : i32
    %425 = vector.broadcast %c1_i32_106 : i32 to vector<8x1xi32>
    %426 = arith.cmpi eq, %107, %425 : vector<8x1xi32>
    %427 = vector.shape_cast %417 : vector<1x1xf32> to vector<1x1xf32>
    %428 = vector.broadcast %427 : vector<1x1xf32> to vector<8x1xf32>
    %429 = arith.select %426, %428, %405 : vector<8x1xi1>, vector<8x1xf32>
    %c1_i32_107 = arith.constant 1 : i32
    %430 = vector.broadcast %c1_i32_107 : i32 to vector<8x1xi32>
    %431 = arith.cmpi eq, %107, %430 : vector<8x1xi32>
    %432 = vector.shape_cast %424 : vector<1x1xf32> to vector<1x1xf32>
    %433 = vector.broadcast %432 : vector<1x1xf32> to vector<8x1xf32>
    %434 = arith.select %431, %433, %410 : vector<8x1xi1>, vector<8x1xf32>
    %435 = vector.broadcast %418 : vector<1x1xi32> to vector<1x8xi32>
    %436 = arith.cmpi eq, %105, %435 : vector<1x8xi32>
    %437 = arith.sitofp %140 : vector<1x8xi32> to vector<1x8xf32>
    %cst_108 = arith.constant 0.000000e+00 : f32
    %438 = vector.broadcast %cst_108 : f32 to vector<1x8xf32>
    %439 = arith.select %436, %437, %438 : vector<1x8xi1>, vector<1x8xf32>
    %cst_109 = arith.constant dense<0.000000e+00> : vector<1xf32>
    %440 = vector.multi_reduction <add>, %439, %cst_109 [1] : vector<1x8xf32> to vector<1xf32>
    %441 = vector.shape_cast %440 : vector<1xf32> to vector<1x1xf32>
    %442 = arith.fptosi %441 : vector<1x1xf32> to vector<1x1xi32>
    %443 = vector.broadcast %442 : vector<1x1xi32> to vector<1x8xi32>
    %444 = arith.cmpi eq, %105, %443 : vector<1x8xi32>
    %cst_110 = arith.constant 0.000000e+00 : f32
    %445 = vector.broadcast %cst_110 : f32 to vector<1x8xf32>
    %446 = arith.select %444, %120, %445 : vector<1x8xi1>, vector<1x8xf32>
    %cst_111 = arith.constant dense<0.000000e+00> : vector<1xf32>
    %447 = vector.multi_reduction <add>, %446, %cst_111 [1] : vector<1x8xf32> to vector<1xf32>
    %448 = vector.shape_cast %447 : vector<1xf32> to vector<1x1xf32>
    %c0_i32_112 = arith.constant 0 : i32
    %449 = vector.broadcast %c0_i32_112 : i32 to vector<8x1xi32>
    %450 = arith.cmpi eq, %107, %449 : vector<8x1xi32>
    %451 = vector.shape_cast %441 : vector<1x1xf32> to vector<1x1xf32>
    %452 = vector.broadcast %451 : vector<1x1xf32> to vector<8x1xf32>
    %453 = arith.select %450, %452, %429 : vector<8x1xi1>, vector<8x1xf32>
    %c0_i32_113 = arith.constant 0 : i32
    %454 = vector.broadcast %c0_i32_113 : i32 to vector<8x1xi32>
    %455 = arith.cmpi eq, %107, %454 : vector<8x1xi32>
    %456 = vector.shape_cast %448 : vector<1x1xf32> to vector<1x1xf32>
    %457 = vector.broadcast %456 : vector<1x1xf32> to vector<8x1xf32>
    %458 = arith.select %455, %457, %434 : vector<8x1xi1>, vector<8x1xf32>
    %cst_114 = arith.constant dense<0xFF800000> : vector<8xf32>
    %459 = vector.multi_reduction <maximumf>, %267, %cst_114 [1] : vector<8x8xf32> to vector<8xf32>
    %460 = vector.shape_cast %459 : vector<8xf32> to vector<8x1xf32>
    %461 = vector.broadcast %460 : vector<8x1xf32> to vector<8x8xf32>
    %462 = arith.subf %267, %461 : vector<8x8xf32>
    %463 = math.exp %462 : vector<8x8xf32>
    %cst_115 = arith.constant dense<0.000000e+00> : vector<8xf32>
    %464 = vector.multi_reduction <add>, %463, %cst_115 [1] : vector<8x8xf32> to vector<8xf32>
    %465 = vector.shape_cast %464 : vector<8xf32> to vector<8x1xf32>
    %466 = vector.broadcast %465 : vector<8x1xf32> to vector<8x8xf32>
    %467 = arith.divf %463, %466 : vector<8x8xf32>
    %c0_116 = arith.constant 0 : index
    %c0_117 = arith.constant 0 : index
    %468 = vector.load %arg2[%c0_116, %c0_117] : memref<8x128xf32, #tpu.memory_space<vmem>>, vector<8x8xf32>
    tpu.vector_store %arg2[%c0_116, %c0_117], %467 {strides = array<i32>} : memref<8x128xf32, #tpu.memory_space<vmem>>, vector<8x8xf32>,
    %c0_118 = arith.constant 0 : index
    %c8 = arith.constant 8 : index
    %469 = vector.load %arg2[%c0_118, %c8] : memref<8x128xf32, #tpu.memory_space<vmem>>, vector<8x1xf32>
    tpu.vector_store %arg2[%c0_118, %c8], %453 {strides = array<i32>} : memref<8x128xf32, #tpu.memory_space<vmem>>, vector<8x1xf32>,
    %c0_119 = arith.constant 0 : index
    %c9 = arith.constant 9 : index
    %470 = vector.load %arg2[%c0_119, %c9] : memref<8x128xf32, #tpu.memory_space<vmem>>, vector<8x1xf32>
    tpu.vector_store %arg2[%c0_119, %c9], %458 {strides = array<i32>} : memref<8x128xf32, #tpu.memory_space<vmem>>, vector<8x1xf32>,
    %cst_120 = arith.constant 0.000000e+00 : f32
    %471 = vector.broadcast %cst_120 : f32 to vector<8x1xf32>
    %472 = vector.broadcast %269 : vector<1x1xf32> to vector<8x1xf32>
    %473 = arith.addf %471, %472 : vector<8x1xf32>
    %c0_121 = arith.constant 0 : index
    %c10 = arith.constant 10 : index
    %474 = vector.load %arg2[%c0_121, %c10] : memref<8x128xf32, #tpu.memory_space<vmem>>, vector<8x1xf32>
    tpu.vector_store %arg2[%c0_121, %c10], %473 {strides = array<i32>} : memref<8x128xf32, #tpu.memory_space<vmem>>, vector<8x1xf32>,
    %cst_122 = arith.constant 0.000000e+00 : f32
    %475 = vector.broadcast %cst_122 : f32 to vector<8x117xf32>
    %c0_123 = arith.constant 0 : index
    %c11 = arith.constant 11 : index
    %476 = vector.load %arg2[%c0_123, %c11] : memref<8x128xf32, #tpu.memory_space<vmem>>, vector<8x117xf32>
    tpu.vector_store %arg2[%c0_123, %c11], %475 {strides = array<i32>} : memref<8x128xf32, #tpu.memory_space<vmem>>, vector<8x117xf32>,
    return
  }
}

</mosaic_0001>

<bundles_post_ra>
// kernel: crf_pair_labeler_forward.1
= control target key start
LH: loop header
LB: loop body
LE: loop exit
PB: predicated region body
PF: predicated region fallthrough
CT: control target
= control target key end

     0   :  { %9 = vsyncpa [#allocation3], 0  ;;  %s3379_s0 = inlined_call_operand.hbm [shape: f32[8,32], index: 0, kind: input, shape index: {}]   ;;  %s3380_s1 = inlined_call_operand.hbm [shape: f32[96,128], index: 1, kind: input, shape index: {}]   ;;  %s3381_s2 = inlined_call_operand.vmem [shape: f32[8,128], index: 2, kind: output, shape index: {0}]   ;;  %s3382_s3 = inlined_call_operand.hbm [shape: f32[64,8], index: 3, kind: output, shape index: {1}]  }
   0x1   :  { %10 = vsyncpa [#allocation6], 0 }
   0x2   :  { %11 = vsyncpa [#allocation4], 0  ;;  %s2739_s12 = smov [#allocation2]   ;;  %s2740_s14 = smov [#allocation5]  }
   0x3   :  { %s18_s13 = sshll.u32 %s2739_s12, 4  ;;  %s27_s15 = sshll.u32 %s2740_s14, 4  ;;  %s19_s13 = int_to_ptr.vmem [resolvable:$true] %s18_s13  ;;  %s2776_s15 = int_to_ptr.vmem [resolvable:$true] %s27_s15 }
   0x4   :  { %s2667_s18 = scalar_lea.hbm %s3379_s0, 128 }
   0x5   :  { %p2668_p0 = scmp.ne.s32.totalorder %s3379_s0, %s2667_s18  ;;  %p2671_p1 = scmp.lt.u32.totalorder %s2667_s18, %s3379_s0 }
   0x7   :  { %p2673_p2 = pnand %p2671_p1, %p2668_p0 }
   0x9   :  { %2676 = shalt.err (!%p2673_p2)
}
   0xa   :  { %s2677_s23 = scalar_lea.vmem %s19_s13, 128  ;;  %p2682_p4 = scmp.lt.s32.totalorder %s19_s13, %s19_s13 }
   0xb   :  { %p2678_p3 = scmp.ne.s32.totalorder %s19_s13, %s2677_s23  ;;  %p2683_p5 = scmp.lt.s32.totalorder %s2677_s23, %s2677_s23 }
   0xd   :  { %p2684_p6 = por %p2683_p5, %p2682_p4 }
   0xf   :  { %p2685_p7 = pnand %p2684_p6, %p2678_p3 }
  0x11   :  { %2688 = shalt.err (!%p2685_p7)
}
  0x12   :  { %21 = dma.hbm_to_vmem [thread:$0]  %s3379_s0, 128, %s19_s13, [#allocation3]  }
  0x13   :  { %s2689_s28 = scalar_lea.hbm %s3380_s1, 1536 }
  0x14   :  { %p2690_p8 = scmp.ne.s32.totalorder %s3380_s1, %s2689_s28  ;;  %p2693_p9 = scmp.lt.u32.totalorder %s2689_s28, %s3380_s1 }
  0x16   :  { %p2695_p10 = pnand %p2693_p9, %p2690_p8 }
  0x18   :  { %2698 = shalt.err (!%p2695_p10)
}
  0x19   :  { %s2699_s6 = scalar_lea.vmem %s2776_s15, 1536  ;;  %p2704_p12 = scmp.lt.s32.totalorder %s2776_s15, %s2776_s15 }
  0x1a   :  { %p2700_p11 = scmp.ne.s32.totalorder %s2776_s15, %s2699_s6  ;;  %p2705_p13 = scmp.lt.s32.totalorder %s2699_s6, %s2699_s6 }
  0x1c   :  { %p2706_p0 = por %p2705_p13, %p2704_p12 }
  0x1e   :  { %p2707_p1 = pnand %p2706_p0, %p2700_p11 }
  0x20   :  { %2710 = shalt.err (!%p2707_p1)
}
  0x21   :  { %s2741_s0 = smov 128   ;;  %s2742_s7 = smov 8  }
  0x22   :  { %33 = dma.hbm_to_vmem [thread:$0]  %s3380_s1, 1536, %s2776_s15, [#allocation6], %s2741_s0, %s2741_s0, %s2742_s7  }
  0x23   :  { %2733 = dma.done.wait [#allocation3], 128  }
  0x24   :  { %2734 = vsyncadd [#allocation3], 4294967168 }
  0x25   :  { %2735 = dma.done.wait [#allocation6], 1536  }
  0x26   :  { %2736 = vsyncadd [#allocation6], 4294965760  ;;  %v2743_v0 = vmov 0.0|0.0   ;;  %vm2744_vm0 = vmmov 0   ;;  %v2745_v1 = vmov 0.0   ;;  %v40_v2 = vld [vmem:[#allocation5] sm:$0xff]  ;;  %v288_v25 = vlaneseq }
  0x27   :  { %2560 = vmatprep.subr.bf16.mxu0 %v2743_v0  ;;  %2431 = vmatprep.mubr.msk.f32.mxu0 %vm2744_vm0, %v2745_v1  ;;  %v41_v3 = vld [vmem:[#allocation5 + $0x8] sm:$0xff]  ;;  %v42_v4 = vld [vmem:[#allocation5 + $0x10] sm:$0xff]  ;;  %v43_v6 = vld [vmem:[#allocation5 + $0x18] sm:$0xff]  ;;  %vm57_vm1 = vcmask 261120   ;;  %vm136_vm2 = vcmask 130048   ;;  %vm353_vm4 = vcmask 64512  }
  0x28   :  { %2566 = vmatprep.subr.bf16.mxu1 %v2743_v0  ;;  %2438 = vmatprep.mubr.msk.f32.mxu1 %vm2744_vm0, %v2745_v1  ;;  %v2561_v5 = vpack.c.bf16 %v41_v3, %v40_v2  ;;  %v2564_v7 = vpack.c.bf16 %v43_v6, %v42_v4  ;;  %v52_v8 = vld [vmem:[#allocation2] sm:$0xff]  ;;  %v45_v9 = vld [vmem:[#allocation5 + $0x28] sm:$0xff]  ;;  %v46_v10 = vld [vmem:[#allocation5 + $0x30] sm:$0xff]  ;;  %v2816_v26 = vand.u32 127, %v288_v25  ;;  %v2821_v28 = vshrl.u32 %v288_v25, 7  ;;  %s2746_s1 = smov 88  }
  0x29   :  { %v2567_v11 = vpack.c.bf16 %v46_v10, %v45_v9  ;;  %v2206_v12 = vld [vmem:[#allocation5 + $0x20] ss:$0 sm:$0xff]  ;;  %v49_v18 = vld [vmem:[#allocation5 + $0x48] sm:$0xff]  ;;  %v2208_v20 = vld [vmem:[#allocation5 + $0x38] ss:$0 sm:$0xff]  ;;  %s2747_s10 = smov 120  }
  0x2a   :  { %2562 = vmatpush3.bf16.msra.mxu0 %v2561_v5  ;;  %v48_v17 = vld [vmem:[#allocation5 + $0x40] sm:$0xff]  ;;  %v2819_v27 = vmul.u32 8, %v2816_v26  ;;  %v2210_v33 = vld [vmem:[#allocation5 + $0x50] ss:$0 sm:$0xff]  ;;  %s2748_s11 = smov 112   ;;  %s2749_s12 = smov 96  }
  0x2b   :  { %2563 = vmatprep.subr.bf16.mxu0 %v2743_v0  ;;  %2568 = vmatpush3.bf16.msra.mxu1 %v2567_v11  ;;  %v2570_v19 = vpack.c.bf16 %v49_v18, %v48_v17  ;;  %s2750_s13 = smov 104   ;;  %s2751_s14 = smov 80   ;;  %v2838_v37 = vadd.s32 8, %v2821_v28  ;;  %v2841_v38 = vadd.s32 16, %v2821_v28  ;;  %v2846_v39 = vadd.s32 24, %v2821_v28 }
  0x2c   :  { %2569 = vmatprep.subr.bf16.mxu1 %v2743_v0  ;;  %v2824_v29 = vadd.s32 1, %v2819_v27  ;;  %v2831_v31 = vadd.s32 4, %v2819_v27  ;;  %s2752_s15 = smov 72   ;;  %v2851_v40 = vadd.s32 32, %v2821_v28  ;;  %v2860_v45 = vadd.s32 40, %v2821_v28  ;;  %s2755_s20 = smov [#allocation7]  }
  0x2d   :  { %v2865_v46 = vadd.s32 48, %v2821_v28  ;;  %v2879_v52 = vadd.s32 56, %v2821_v28  ;;  %v2905_v59 = vadd.s32 5, %v2819_v27  ;;  %v2954_v10 = vadd.s32 2, %v2819_v27  ;;  %s2191_s21 = sshll.u32 %s2755_s20, 4  ;;  %s2192_s21 = int_to_ptr.vmem [resolvable:$true] %s2191_s21 }
  0x2e   :  { %2565 = vmatpush3.bf16.msra.mxu0 %v2564_v7  ;;  %vm325_vm3 = vcmp.eq.s32.totalorder %v2821_v28, %v2824_v29  ;;  %vm943_vm5 = vcmp.eq.s32.totalorder %v2821_v28, %v2831_v31  ;;  %vm326_vm6 = vcmp.eq.s32.totalorder %v2838_v37, %v2824_v29  ;;  %vm327_vm7 = vcmp.eq.s32.totalorder %v2841_v38, %v2824_v29  ;;  %s2711_s22 = scalar_lea.vmem %s2192_s21, 1024  ;;  %p2716_p3 = scmp.lt.s32.totalorder %s2192_s21, %s2192_s21 }
  0x2f   :  { %v2220_v30 = vsel %vm325_vm3, 1.0, %v2745_v1  ;;  %v2276_v32 = vsel %vm943_vm5, 1.0, %v2745_v1  ;;  %v2221_v43 = vsel %vm326_vm6, 1.0, %v2745_v1  ;;  %v2222_v44 = vsel %vm327_vm7, 1.0, %v2745_v1  ;;  %p2712_p2 = scmp.ne.s32.totalorder %s2192_s21, %s2711_s22  ;;  %p2717_p4 = scmp.lt.s32.totalorder %s2711_s22, %s2711_s22 }
  0x30   :  { %vm328_vm8 = vcmp.eq.s32.totalorder %v2846_v39, %v2824_v29  ;;  %vm944_vm9 = vcmp.eq.s32.totalorder %v2838_v37, %v2831_v31  ;;  %vm329_vm10 = vcmp.eq.s32.totalorder %v2851_v40, %v2824_v29  ;;  %vm945_vm11 = vcmp.eq.s32.totalorder %v2841_v38, %v2831_v31 }
  0x31   :  { %2432 = vmatmul.mubr.msk.f32.vlgmr.msra.gmra.mrb[0].mxu0 %vm57_vm1, %v52_v8  ;;  %v2223_v49 = vsel %vm328_vm8, 1.0, %v2745_v1  ;;  %v2277_v50 = vsel %vm944_vm9, 1.0, %v2745_v1  ;;  %v2224_v51 = vsel %vm329_vm10, 1.0, %v2745_v1  ;;  %vm330_vm12 = vcmp.eq.s32.totalorder %v2860_v45, %v2824_v29  ;;  %p2718_p5 = por %p2717_p4, %p2716_p3 }
  0x32   :  { %2506 = vmatprep.mubr.msk.f32.mxu0 %vm353_vm4, %v2276_v32  ;;  %vm946_vm13 = vcmp.eq.s32.totalorder %v2846_v39, %v2831_v31  ;;  %v2278_v53 = vsel %vm945_vm11, 1.0, %v2745_v1  ;;  %vm331_vm14 = vcmp.eq.s32.totalorder %v2865_v46, %v2824_v29  ;;  %vm947_vm15 = vcmp.eq.s32.totalorder %v2851_v40, %v2831_v31 }
  0x33   :  { %v2225_v55 = vsel %vm330_vm12, 1.0, %v2745_v1  ;;  %v2279_v56 = vsel %vm946_vm13, 1.0, %v2745_v1  ;;  %v2226_v57 = vsel %vm331_vm14, 1.0, %v2745_v1  ;;  %v2280_v58 = vsel %vm947_vm15, 1.0, %v2745_v1  ;;  %p2719_p6 = pnand %p2718_p5, %p2712_p2 }
  0x34   :  { %vm948_vm1 = vcmp.eq.s32.totalorder %v2860_v45, %v2831_v31  ;;  %vm949_vm3 = vcmp.eq.s32.totalorder %v2865_v46, %v2831_v31  ;;  %vm301_vm5 = vcmp.eq.s32.totalorder %v2838_v37, %v2819_v27  ;;  %vm950_vm6 = vcmp.eq.s32.totalorder %v2879_v52, %v2831_v31 }
  0x35   :  { %v2281_v61 = vsel %vm948_vm1, 1.0, %v2745_v1  ;;  %v2282_v63 = vsel %vm949_vm3, 1.0, %v2745_v1  ;;  %vm302_vm7 = vcmp.eq.s32.totalorder %v2841_v38, %v2819_v27  ;;  %vm1108_vm8 = vcmp.eq.s32.totalorder %v2821_v28, %v2905_v59 }
  0x36   :  { %v2213_v0 = vsel %vm301_vm5, 1.0, %v2745_v1  ;;  %v2283_v2 = vsel %vm950_vm6, 1.0, %v2745_v1  ;;  %v2214_v3 = vsel %vm302_vm7, 1.0, %v2745_v1  ;;  %vm303_vm9 = vcmp.eq.s32.totalorder %v2846_v39, %v2819_v27 }
  0x37   :  { %vm1109_vm10 = vcmp.eq.s32.totalorder %v2838_v37, %v2905_v59  ;;  %v2292_v4 = vsel %vm1108_vm8, 1.0, %v2745_v1  ;;  %vm304_vm11 = vcmp.eq.s32.totalorder %v2851_v40, %v2819_v27  ;;  %vm1110_vm12 = vcmp.eq.s32.totalorder %v2841_v38, %v2905_v59 }
  0x38   :  { %v2215_v6 = vsel %vm303_vm9, 1.0, %v2745_v1  ;;  %v2293_v7 = vsel %vm1109_vm10, 1.0, %v2745_v1  ;;  %v2216_v8 = vsel %vm304_vm11, 1.0, %v2745_v1  ;;  %vm305_vm13 = vcmp.eq.s32.totalorder %v2860_v45, %v2819_v27 }
  0x39   :  { %vm1111_vm14 = vcmp.eq.s32.totalorder %v2846_v39, %v2905_v59  ;;  %v2294_v9 = vsel %vm1110_vm12, 1.0, %v2745_v1  ;;  %vm306_vm15 = vcmp.eq.s32.totalorder %v2865_v46, %v2819_v27  ;;  %vm307_vm1 = vcmp.eq.s32.totalorder %v2879_v52, %v2819_v27 }
  0x3a   :  { %vm613_vm3 = vcmp.eq.s32.totalorder %v2821_v28, %v2954_v10  ;;  %vm1114_vm5 = vcmp.eq.s32.totalorder %v2865_v46, %v2905_v59  ;;  %v2219_v17 = vsel %vm307_vm1, 1.0, %v2745_v1  ;;  %vm614_vm6 = vcmp.eq.s32.totalorder %v2838_v37, %v2954_v10 }
  0x3b   :  { %vm1115_vm7 = vcmp.eq.s32.totalorder %v2879_v52, %v2905_v59  ;;  %vm615_vm8 = vcmp.eq.s32.totalorder %v2841_v38, %v2954_v10  ;;  %vm616_vm10 = vcmp.eq.s32.totalorder %v2846_v39, %v2954_v10  ;;  %vm617_vm12 = vcmp.eq.s32.totalorder %v2851_v40, %v2954_v10 }
  0x3c   :  { %v2247_v25 = vsel %vm616_vm10, 1.0, %v2745_v1  ;;  %v3024_v32 = vadd.s32 3, %v2819_v27 }
 0x104   :  { %v127_v13 = vpop.f32.mrb[0].mxu0 }
 0x105   :  { %v128_v14 = vadd.f32 %v2206_v12, %v127_v13  ;;  %v2433_v15 = vpop.f32.mrb[1].mxu0  ;;  %v2217_v12 = vsel %vm305_vm13, 1.0, %v2745_v1  ;;  %v2295_v13 = vsel %vm1111_vm14, 1.0, %v2745_v1  ;;  %vm618_vm14 = vcmp.eq.s32.totalorder %v2860_v45, %v2954_v10 }
 0x107   :  { %v131_v16 = vmax.f32 %v128_v14, 0.0  ;;  %v2218_v14 = vsel %vm306_vm15, 1.0, %v2745_v1 }
 0x109   :  { %2439 = vmatmul.mubr.msk.f32.vlgmr.msra.gmra.mrb[0].mxu1 %vm136_vm2, %v131_v16  ;;  %v2975_v16 = vadd.s32 6, %v2819_v27 }
 0x10a   :  { %2445 = vmatprep.mubr.msk.f32.mxu1 %vm2744_vm0, %v2745_v1  ;;  %2571 = vmatpush3.bf16.msra.mxu1 %v2570_v19  ;;  %vm332_vm0 = vcmp.eq.s32.totalorder %v2879_v52, %v2824_v29  ;;  %v2244_v19 = vsel %vm613_vm3, 1.0, %v2745_v1 }
 0x10b   :  { %v2227_v60 = vsel %vm332_vm0, 1.0, %v2745_v1  ;;  %vm1112_vm0 = vcmp.eq.s32.totalorder %v2851_v40, %v2905_v59  ;;  %vm1273_vm9 = vcmp.eq.s32.totalorder %v2821_v28, %v2975_v16  ;;  %vm1274_vm11 = vcmp.eq.s32.totalorder %v2838_v37, %v2975_v16 }
 0x10c   :  { %v2296_v15 = vsel %vm1112_vm0, 1.0, %v2745_v1  ;;  %vm1275_vm13 = vcmp.eq.s32.totalorder %v2841_v38, %v2975_v16  ;;  %v2309_v29 = vsel %vm1274_vm11, 1.0, %v2745_v1  ;;  %vm1276_vm15 = vcmp.eq.s32.totalorder %v2846_v39, %v2975_v16 }
 0x10d   :  { %v2310_v31 = vsel %vm1275_vm13, 1.0, %v2745_v1  ;;  %vm619_vm0 = vcmp.eq.s32.totalorder %v2865_v46, %v2954_v10  ;;  %vm1277_vm1 = vcmp.eq.s32.totalorder %v2851_v40, %v2975_v16  ;;  %vm1278_vm3 = vcmp.eq.s32.totalorder %v2860_v45, %v2975_v16 }
 0x10e   :  { %vm781_vm11 = vcmp.eq.s32.totalorder %v2846_v39, %v3024_v32  ;;  %vm782_vm13 = vcmp.eq.s32.totalorder %v2851_v40, %v3024_v32 }
 0x1dc   :  { %v206_v21 = vpop.f32.mrb[0].mxu1 }
 0x1dd   :  { %v207_v22 = vadd.f32 %v2208_v20, %v206_v21  ;;  %v2440_v23 = vpop.f32.mrb[1].mxu1  ;;  %v2298_v20 = vsel %vm1114_vm5, 1.0, %v2745_v1  ;;  %v2245_v21 = vsel %vm614_vm6, 1.0, %v2745_v1  ;;  %vm778_vm5 = vcmp.eq.s32.totalorder %v2821_v28, %v3024_v32 }
 0x1de   :  { %v2246_v23 = vsel %vm615_vm8, 1.0, %v2745_v1  ;;  %vm1279_vm6 = vcmp.eq.s32.totalorder %v2865_v46, %v2975_v16  ;;  %vm1280_vm8 = vcmp.eq.s32.totalorder %v2879_v52, %v2975_v16 }
 0x1df   :  { %v210_v24 = vmax.f32 %v207_v22, 0.0  ;;  %v2299_v22 = vsel %vm1115_vm7, 1.0, %v2745_v1  ;;  %vm779_vm7 = vcmp.eq.s32.totalorder %v2838_v37, %v3024_v32 }
 0x1e1   :  { %2446 = vmatmul.mubr.msk.f32.vlgmr.msra.gmra.mrb[2].mxu1 %vm136_vm2, %v210_v24  ;;  %vm300_vm2 = vcmp.eq.s32.totalorder %v2821_v28, %v2819_v27  ;;  %v2308_v24 = vsel %vm1273_vm9, 1.0, %v2745_v1  ;;  %vm780_vm9 = vcmp.eq.s32.totalorder %v2841_v38, %v3024_v32 }
 0x1e2   :  { %2450 = vmatprep.mubr.msk.f32.mxu1 %vm353_vm4, %v2220_v30  ;;  %v2212_v62 = vsel %vm300_vm2, 1.0, %v2745_v1  ;;  %vm1113_vm2 = vcmp.eq.s32.totalorder %v2860_v45, %v2905_v59  ;;  %v2248_v30 = vsel %vm617_vm12, 1.0, %v2745_v1 }
 0x1e3   :  { %v2297_v18 = vsel %vm1113_vm2, 1.0, %v2745_v1  ;;  %vm620_vm2 = vcmp.eq.s32.totalorder %v2879_v52, %v2954_v10 }
 0x2b4   :  { %v284_v34 = vpop.f32.mrb[2].mxu1 }
 0x2b5   :  { %v285_v35 = vadd.f32 %v2210_v33, %v284_v34  ;;  %v2447_v36 = vpop.f32.mrb[3].mxu1  ;;  %v2249_v33 = vsel %vm618_vm14, 1.0, %v2745_v1  ;;  %v2311_v34 = vsel %vm1276_vm15, 1.0, %v2745_v1  ;;  %vm783_vm15 = vcmp.eq.s32.totalorder %v2860_v45, %v3024_v32 }
 0x2b6   :  { %v2312_v36 = vsel %vm1277_vm1, 1.0, %v2745_v1  ;;  %vm784_vm1 = vcmp.eq.s32.totalorder %v2865_v46, %v3024_v32 }
 0x2b7   :  { %1132 = vrot.lane.b32.xlu1 %v285_v35, %s2746_s1  ;;  %350 = vrot.lane.b32.xlu0 %v285_v35, %s2747_s10 }
 0x2bb   :  { %637 = vrot.lane.b32.xlu1 %v285_v35, %s2748_s11  ;;  %967 = vrot.lane.b32.xlu0 %v285_v35, %s2749_s12 }
 0x2bf   :  { %802 = vrot.lane.b32.xlu1 %v285_v35, %s2750_s13  ;;  %1297 = vrot.lane.b32.xlu0 %v285_v35, %s2751_s14 }
 0x2c3   :  { %1462 = vrot.lane.b32.xlu0 %v285_v35, %s2752_s15 }
 0x329   :  { %v1133_v41 = vpop.permute.xlu1 %1132  ;;  %v351_v42 = vpop.permute.xlu0 %350 }
 0x32a   :  { %2448 = vmatprep.subr.mxu1 %v351_v42 }
 0x32b   :  { %2449 = vmatpush3.msra.mxu1 %v351_v42  ;;  %v2251_v42 = vsel %vm620_vm2, 1.0, %v2745_v1 }
 0x32c   :  { %2451 = vmatmul.mubr.msk.f32.vlgmr.msra.gmra.mrb[4].mxu1 %vm353_vm4, %v2221_v43  ;;  %2462 = vmatprep.subr.mxu1 %v285_v35  ;;  %v2313_v43 = vsel %vm1278_vm3, 1.0, %v2745_v1  ;;  %vm785_vm3 = vcmp.eq.s32.totalorder %v2879_v52, %v3024_v32 }
 0x32d   :  { %v638_v47 = vpop.permute.xlu1 %637  ;;  %2463 = vmatpush3.msra.mxu1 %v285_v35  ;;  %v968_v48 = vpop.permute.xlu0 %967  ;;  %2453 = vmatprep.mubr.msk.f32.mxu1 %vm353_vm4, %v2222_v44  ;;  %v2250_v35 = vsel %vm619_vm0, 1.0, %v2745_v1  ;;  %v2260_v44 = vsel %vm778_vm5, 1.0, %v2745_v1 }
 0x32e   :  { %2476 = vmatprep.subr.mxu1 %v638_v47  ;;  %2504 = vmatprep.subr.mxu0 %v968_v48 }
 0x32f   :  { %2505 = vmatpush3.msra.mxu0 %v968_v48  ;;  %v2315_v48 = vsel %vm1280_vm8, 1.0, %v2745_v1  ;;  %vm3383_vm8 = vcmp.eq.s32.totalorder %v2821_v28, 0 }
 0x330   :  { %2454 = vmatmul.mubr.msk.f32.gmra.mrb[6].mxu1 %vm353_vm4, %v2223_v49  ;;  %2507 = vmatmul.mubr.msk.f32.vlgmr.msra.gmra.mrb[2].mxu0 %vm353_vm4, %v2277_v50  ;;  %v2262_v49 = vsel %vm780_vm9, 1.0, %v2745_v1  ;;  %vm1682_vm9 = vcmp.eq.s32.totalorder %v2821_v28, 1 }
 0x331   :  { %2518 = vmatprep.subr.mxu0 %v1133_v41  ;;  %v1298_v54 = vpop.permute.xlu0 %1297  ;;  %2456 = vmatprep.mubr.msk.f32.mxu1 %vm353_vm4, %v2224_v51  ;;  %v803_v5 = vpop.permute.xlu1 %802  ;;  %v2263_v51 = vsel %vm781_vm11, 1.0, %v2745_v1  ;;  %vm1806_vm11 = vcmp.eq.s32.totalorder %v2821_v28, 3 }
 0x332   :  { %2519 = vmatpush3.msra.mxu0 %v1133_v41  ;;  %2509 = vmatprep.mubr.msk.f32.mxu0 %vm353_vm4, %v2278_v53  ;;  %v1437_v41 = vadd.s32 7, %v2819_v27  ;;  %v2261_v27 = vsel %vm779_vm7, 1.0, %v2745_v1 }
 0x333   :  { %2532 = vmatprep.subr.mxu0 %v1298_v54 }
 0x334   :  { %2457 = vmatmul.mubr.msk.f32.gmra.mrb[8].mxu1 %vm353_vm4, %v2225_v55  ;;  %2510 = vmatmul.mubr.msk.f32.gmra.mrb[4].mxu0 %vm353_vm4, %v2279_v56  ;;  %vm1438_vm10 = vcmp.eq.s32.totalorder %v2821_v28, %v1437_v41  ;;  %vm1439_vm12 = vcmp.eq.s32.totalorder %v2838_v37, %v1437_v41  ;;  %vm1440_vm14 = vcmp.eq.s32.totalorder %v2841_v38, %v1437_v41  ;;  %v2265_v38 = vsel %vm783_vm15, 1.0, %v2745_v1 }
 0x335   :  { %2459 = vmatprep.mubr.msk.f32.mxu1 %vm353_vm4, %v2226_v57  ;;  %2512 = vmatprep.mubr.msk.f32.mxu0 %vm353_vm4, %v2280_v58  ;;  %v1463_v11 = vpop.permute.xlu0 %1462  ;;  %v2324_v50 = vsel %vm1438_vm10, 1.0, %v2745_v1  ;;  %v2325_v53 = vsel %vm1439_vm12, 1.0, %v2745_v1  ;;  %v2326_v37 = vsel %vm1440_vm14, 1.0, %v2745_v1  ;;  %vm1441_vm0 = vcmp.eq.s32.totalorder %v2846_v39, %v1437_v41 }
 0x336   :  { %vm1442_vm2 = vcmp.eq.s32.totalorder %v2851_v40, %v1437_v41  ;;  %v2327_v55 = vsel %vm1441_vm0, 1.0, %v2745_v1  ;;  %v2266_v56 = vsel %vm784_vm1, 1.0, %v2745_v1  ;;  %vm1443_vm5 = vcmp.eq.s32.totalorder %v2860_v45, %v1437_v41 }
 0x337   :  { %v2328_v39 = vsel %vm1442_vm2, 1.0, %v2745_v1  ;;  %v2267_v40 = vsel %vm785_vm3, 1.0, %v2745_v1  ;;  %v2329_v57 = vsel %vm1443_vm5, 1.0, %v2745_v1  ;;  %vm1445_vm7 = vcmp.eq.s32.totalorder %v2879_v52, %v1437_v41 }
 0x338   :  { %2460 = vmatmul.mubr.msk.f32.gmra.mrb[10].mxu1 %vm353_vm4, %v2227_v60  ;;  %2513 = vmatmul.mubr.msk.f32.gmra.mrb[6].mxu0 %vm353_vm4, %v2281_v61  ;;  %v2331_v45 = vsel %vm1445_vm7, 1.0, %v2745_v1  ;;  %vm1744_vm10 = vcmp.eq.s32.totalorder %v2821_v28, 2  ;;  %vm1868_vm12 = vcmp.eq.s32.totalorder %v2821_v28, 4  ;;  %vm1992_vm14 = vcmp.eq.s32.totalorder %v2821_v28, 6 }
 0x339   :  { %2464 = vmatprep.mubr.msk.f32.mxu1 %vm353_vm4, %v2212_v62  ;;  %2515 = vmatprep.mubr.msk.f32.mxu0 %vm353_vm4, %v2282_v63  ;;  %v51_v63 = vld [vmem:[#allocation5 + $0x58] sm:$0xff]  ;;  %vm2054_vm15 = vcmp.eq.s32.totalorder %v2821_v28, 7 }
 0x33c   :  { %2465 = vmatmul.mubr.msk.f32.vlgmr.msra.gmra.mrb[4].mxu1 %vm353_vm4, %v2213_v0  ;;  %2516 = vmatmul.mubr.msk.f32.gmra.mrb[8].mxu0 %vm353_vm4, %v2283_v2 }
 0x33d   :  { %2477 = vmatpush3.msra.mxu1 %v638_v47  ;;  %2467 = vmatprep.mubr.msk.f32.mxu1 %vm353_vm4, %v2214_v3  ;;  %v2314_v47 = vsel %vm1279_vm6, 1.0, %v2745_v1  ;;  %vm1444_vm6 = vcmp.eq.s32.totalorder %v2865_v46, %v1437_v41  ;;  %v2753_v46 = vmov 0  }
 0x33e   :  { %2490 = vmatprep.subr.mxu1 %v803_v5  ;;  %2520 = vmatprep.mubr.msk.f32.mxu0 %vm353_vm4, %v2292_v4  ;;  %v2330_v58 = vsel %vm1444_vm6, 1.0, %v2745_v1  ;;  %v2754_v4 = vmov -100000.0  }
 0x33f   :  { %2661 = vset.pattern.permute.xlu0 %v2753_v46 }
 0x340   :  { %2468 = vmatmul.mubr.msk.f32.gmra.mrb[6].mxu1 %vm353_vm4, %v2215_v6  ;;  %2521 = vmatmul.mubr.msk.f32.vlgmr.msra.gmra.mrb[2].mxu0 %vm353_vm4, %v2293_v7 }
 0x341   :  { %2533 = vmatpush3.msra.mxu0 %v1298_v54  ;;  %2470 = vmatprep.mubr.msk.f32.mxu1 %vm353_vm4, %v2216_v8  ;;  %v2264_v54 = vsel %vm782_vm13, 1.0, %v2745_v1  ;;  %vm1930_vm13 = vcmp.eq.s32.totalorder %v2821_v28, 5 }
 0x342   :  { %2546 = vmatprep.subr.mxu0 %v1463_v11  ;;  %2523 = vmatprep.mubr.msk.f32.mxu0 %vm353_vm4, %v2294_v9 }
 0x344   :  { %2471 = vmatmul.mubr.msk.f32.gmra.mrb[8].mxu1 %vm353_vm4, %v2217_v12  ;;  %2524 = vmatmul.mubr.msk.f32.gmra.mrb[4].mxu0 %vm353_vm4, %v2295_v13 }
 0x345   :  { %2473 = vmatprep.mubr.msk.f32.mxu1 %vm353_vm4, %v2218_v14  ;;  %2526 = vmatprep.mubr.msk.f32.mxu0 %vm353_vm4, %v2296_v15 }
 0x348   :  { %2474 = vmatmul.mubr.msk.f32.gmra.mrb[10].mxu1 %vm353_vm4, %v2219_v17  ;;  %2527 = vmatmul.mubr.msk.f32.gmra.mrb[6].mxu0 %vm353_vm4, %v2297_v18 }
 0x349   :  { %2478 = vmatprep.mubr.msk.f32.mxu1 %vm353_vm4, %v2244_v19  ;;  %2529 = vmatprep.mubr.msk.f32.mxu0 %vm353_vm4, %v2298_v20 }
 0x34c   :  { %2479 = vmatmul.mubr.msk.f32.vlgmr.msra.gmra.mrb[4].mxu1 %vm353_vm4, %v2245_v21  ;;  %2530 = vmatmul.mubr.msk.f32.gmra.mrb[8].mxu0 %vm353_vm4, %v2299_v22 }
 0x34d   :  { %2491 = vmatpush3.msra.mxu1 %v803_v5  ;;  %2481 = vmatprep.mubr.msk.f32.mxu1 %vm353_vm4, %v2246_v23  ;;  %v1611_v5 = vsel %vm3383_vm8, 0.0, %v2754_v4 }
 0x34e   :  { %2534 = vmatprep.mubr.msk.f32.mxu0 %vm353_vm4, %v2308_v24 }
 0x350   :  { %2482 = vmatmul.mubr.msk.f32.gmra.mrb[6].mxu1 %vm353_vm4, %v2247_v25  ;;  %2535 = vmatmul.mubr.msk.f32.vlgmr.msra.gmra.mrb[2].mxu0 %vm353_vm4, %v2309_v29 }
 0x351   :  { %2547 = vmatpush3.msra.mxu0 %v1463_v11  ;;  %2484 = vmatprep.mubr.msk.f32.mxu1 %vm353_vm4, %v2248_v30 }
 0x352   :  { %2537 = vmatprep.mubr.msk.f32.mxu0 %vm353_vm4, %v2310_v31 }
 0x354   :  { %2485 = vmatmul.mubr.msk.f32.gmra.mrb[8].mxu1 %vm353_vm4, %v2249_v33  ;;  %2538 = vmatmul.mubr.msk.f32.gmra.mrb[4].mxu0 %vm353_vm4, %v2311_v34 }
 0x355   :  { %2487 = vmatprep.mubr.msk.f32.mxu1 %vm353_vm4, %v2250_v35  ;;  %2540 = vmatprep.mubr.msk.f32.mxu0 %vm353_vm4, %v2312_v36 }
 0x358   :  { %2488 = vmatmul.mubr.msk.f32.gmra.mrb[10].mxu1 %vm353_vm4, %v2251_v42  ;;  %2541 = vmatmul.mubr.msk.f32.gmra.mrb[6].mxu0 %vm353_vm4, %v2313_v43 }
 0x359   :  { %2492 = vmatprep.mubr.msk.f32.mxu1 %vm353_vm4, %v2260_v44  ;;  %2543 = vmatprep.mubr.msk.f32.mxu0 %vm353_vm4, %v2314_v47 }
 0x35c   :  { %2493 = vmatmul.mubr.msk.f32.vlgmr.msra.gmra.mrb[4].mxu1 %vm353_vm4, %v2261_v27  ;;  %2544 = vmatmul.mubr.msk.f32.gmra.mrb[8].mxu0 %vm353_vm4, %v2315_v48 }
 0x35d   :  { %2495 = vmatprep.mubr.msk.f32.mxu1 %vm353_vm4, %v2262_v49  ;;  %2548 = vmatprep.mubr.msk.f32.mxu0 %vm353_vm4, %v2324_v50 }
 0x360   :  { %2496 = vmatmul.mubr.msk.f32.gmra.mrb[6].mxu1 %vm353_vm4, %v2263_v51  ;;  %2549 = vmatmul.mubr.msk.f32.vlgmr.msra.gmra.mrb[2].mxu0 %vm353_vm4, %v2325_v53 }
 0x361   :  { %2498 = vmatprep.mubr.msk.f32.mxu1 %vm353_vm4, %v2264_v54  ;;  %2551 = vmatprep.mubr.msk.f32.mxu0 %vm353_vm4, %v2326_v37 }
 0x364   :  { %2499 = vmatmul.mubr.msk.f32.gmra.mrb[8].mxu1 %vm353_vm4, %v2265_v38  ;;  %2552 = vmatmul.mubr.msk.f32.gmra.mrb[4].mxu0 %vm353_vm4, %v2327_v55 }
 0x365   :  { %2501 = vmatprep.mubr.msk.f32.mxu1 %vm353_vm4, %v2266_v56  ;;  %2554 = vmatprep.mubr.msk.f32.mxu0 %vm353_vm4, %v2328_v39 }
 0x368   :  { %2502 = vmatmul.mubr.msk.f32.gmra.mrb[10].mxu1 %vm353_vm4, %v2267_v40  ;;  %2555 = vmatmul.mubr.msk.f32.gmra.mrb[6].mxu0 %vm353_vm4, %v2329_v57 }
 0x369   :  { %2557 = vmatprep.mubr.msk.f32.mxu0 %vm353_vm4, %v2330_v58 }
 0x36c   :  { %2558 = vmatmul.mubr.msk.f32.gmra.mrb[8].mxu0 %vm353_vm4, %v2331_v45 }
 0x42f   :  { %v2494_v59 = vpop.f32.mrb[4].mxu1 }
 0x430   :  { %v895_v60 = vpop.f32.mrb[5].mxu1 }
 0x433   :  { %v2497_v61 = vpop.f32.mrb[6].mxu1  ;;  %v2550_v62 = vpop.f32.mrb[2].mxu0 }
 0x434   :  { %v2572_v52 = vadd.f32 %v2550_v62, %v2494_v59  ;;  %v905_v0 = vpop.f32.mrb[7].mxu1  ;;  %v1555_v2 = vpop.f32.mrb[3].mxu0 }
 0x435   :  { %v2573_v3 = vadd.f32 %v1555_v2, %v895_v60 }
 0x436   :  { %1603 = vst.msk [vmem:[#allocation7 + $0x8] sm:$0xff] %vm353_vm4, %v2572_v52  ;;  %v1656_v6 = vadd.f32 %v2572_v52, %v51_v63 }
 0x437   :  { %1602 = vst.msk [vmem:[#allocation7] sm:$0xff] %vm353_vm4, %v2573_v3  ;;  %v1612_v7 = vadd.f32 %v2573_v3, %v51_v63  ;;  %v2500_v8 = vpop.f32.mrb[8].mxu1  ;;  %v2553_v9 = vpop.f32.mrb[4].mxu0 }
 0x438   :  { %v2574_v10 = vadd.f32 %v2553_v9, %v2497_v61  ;;  %v915_v11 = vpop.f32.mrb[9].mxu1  ;;  %v1565_v12 = vpop.f32.mrb[5].mxu0 }
 0x439   :  { %v1613_v13 = vadd.f32 %v1612_v7, %v1611_v5  ;;  %v2575_v14 = vadd.f32 %v1565_v12, %v905_v0 }
 0x43a   :  { %1605 = vst.msk [vmem:[#allocation7 + $0x18] sm:$0xff] %vm353_vm4, %v2574_v10  ;;  %v1780_v15 = vadd.f32 %v2574_v10, %v51_v63 }
 0x43b   :  { %v1614_v16 = vsel %vm353_vm4, %v1613_v13, -inf  ;;  %1604 = vst.msk [vmem:[#allocation7 + $0x10] sm:$0xff] %vm353_vm4, %v2575_v14  ;;  %v2503_v17 = vpop.f32.mrb[10].mxu1  ;;  %v2556_v18 = vpop.f32.mrb[6].mxu0  ;;  %v1718_v19 = vadd.f32 %v2575_v14, %v51_v63 }
 0x43c   :  { %v1615_v20 = vrot.slane %v1614_v16, 4  ;;  %v2576_v21 = vadd.f32 %v2556_v18, %v2500_v8  ;;  %v925_v22 = vpop.f32.mrb[11].mxu1  ;;  %v1575_v23 = vpop.f32.mrb[7].mxu0 }
 0x43d   :  { %v2577_v24 = vadd.f32 %v1575_v23, %v915_v11 }
 0x43e   :  { %v1616_v25 = vmax.f32 %v1614_v16, %v1615_v20  ;;  %1607 = vst.msk [vmem:[#allocation7 + $0x28] sm:$0xff] %vm353_vm4, %v2576_v21  ;;  %v3120_v29 = vadd.f32 %v2576_v21, %v51_v63 }
 0x43f   :  { %1606 = vst.msk [vmem:[#allocation7 + $0x20] sm:$0xff] %vm353_vm4, %v2577_v24  ;;  %v2559_v30 = vpop.f32.mrb[8].mxu0  ;;  %v1842_v31 = vadd.f32 %v2577_v24, %v51_v63 }
 0x440   :  { %v2578_v32 = vadd.f32 %v2559_v30, %v2503_v17  ;;  %v1585_v33 = vpop.f32.mrb[9].mxu0  ;;  %v1617_v34 = vrot.slane %v1616_v25, 2 }
 0x441   :  { %v2579_v35 = vadd.f32 %v1585_v33, %v925_v22 }
 0x442   :  { %1609 = vst.msk [vmem:[#allocation7 + $0x38] sm:$0xff] %vm353_vm4, %v2578_v32  ;;  %v1618_v36 = vmax.f32 %v1616_v25, %v1617_v34  ;;  %v3124_v41 = vadd.f32 %v2578_v32, %v51_v63 }
 0x443   :  { %1608 = vst.msk [vmem:[#allocation7 + $0x30] sm:$0xff] %vm353_vm4, %v2579_v35  ;;  %v3127_v42 = vadd.f32 %v2579_v35, %v51_v63 }
 0x444   :  { %v1619_v43 = vrot.slane %v1618_v36, 1 }
 0x446   :  { %v3129_v44 = vmax.f32 %v1618_v36, %v1619_v43 }
 0x448   :  { %1624 = vxpose.xlu1.b32.start.end [1/1] (short) (narrow) %v3129_v44, 8 }
 0x466   :  { %2662 = vset.pattern.permute.xlu1 %v2753_v46 }
 0x4c8   :  { %v1640_v47 = vpop.trf.xlu1 }
 0x4c9   :  { %1659 = vperm.xlu0 %2661, %v1640_v47  }
 0x548   :  { %v1660_v27 = vpop.permute.xlu0 %1659 }
 0x549   :  { %v3132_v48 = vadd.f32 %v1660_v27, %v1656_v6 }
 0x54b   :  { %v1663_v49 = vsel %vm353_vm4, %v3132_v48, -inf }
 0x54c   :  { %v1664_v50 = vrot.slane %v1663_v49, 4 }
 0x54e   :  { %v1665_v51 = vmax.f32 %v1663_v49, %v1664_v50 }
 0x550   :  { %v1666_v53 = vrot.slane %v1665_v51, 2 }
 0x552   :  { %v1667_v54 = vmax.f32 %v1665_v51, %v1666_v53 }
 0x554   :  { %v1668_v37 = vrot.slane %v1667_v54, 1 }
 0x556   :  { %v3136_v38 = vmax.f32 %v1667_v54, %v1668_v37 }
 0x558   :  { %1686 = vxpose.xlu0.b32.start.end [1/1] (short) (narrow) %v3136_v38, 8 }
 0x5d8   :  { %v1702_v55 = vpop.trf.xlu0 }
 0x5d9   :  { %1721 = vperm.xlu1 %2662, %v1702_v55  }
 0x658   :  { %v1722_v56 = vpop.permute.xlu1 %1721 }
 0x659   :  { %v3139_v39 = vadd.f32 %v1722_v56, %v1718_v19 }
 0x65b   :  { %v1725_v40 = vsel %vm353_vm4, %v3139_v39, -inf }
 0x65c   :  { %v1726_v57 = vrot.slane %v1725_v40, 4 }
 0x65e   :  { %v1727_v58 = vmax.f32 %v1725_v40, %v1726_v57 }
 0x660   :  { %v1728_v45 = vrot.slane %v1727_v58, 2 }
 0x662   :  { %v1729_v46 = vmax.f32 %v1727_v58, %v1728_v45  ;;  %v1623_v58 = vsel %vm3383_vm8, %v3129_v44, 0.0 }
 0x663   :  { %v1685_v45 = vsel %vm1682_vm9, %v3136_v38, %v1623_v58 }
 0x664   :  { %v1730_v59 = vrot.slane %v1729_v46, 1 }
 0x666   :  { %v3143_v60 = vmax.f32 %v1729_v46, %v1730_v59 }
 0x668   :  { %1748 = vxpose.xlu0.b32.start.end [1/1] (short) (narrow) %v3143_v60, 8  ;;  %v1747_v46 = vsel %vm1744_vm10, %v3143_v60, %v1685_v45 }
 0x6e8   :  { %v1764_v61 = vpop.trf.xlu0 }
 0x6e9   :  { %1783 = vperm.xlu0 %2661, %v1764_v61  }
 0x768   :  { %v1784_v62 = vpop.permute.xlu0 %1783 }
 0x769   :  { %v3146_v63 = vadd.f32 %v1784_v62, %v1780_v15 }
 0x76b   :  { %v1787_v52 = vsel %vm353_vm4, %v3146_v63, -inf }
 0x76c   :  { %v1788_v0 = vrot.slane %v1787_v52, 4 }
 0x76e   :  { %v1789_v2 = vmax.f32 %v1787_v52, %v1788_v0 }
 0x770   :  { %v1790_v3 = vrot.slane %v1789_v2, 2 }
 0x772   :  { %v1791_v4 = vmax.f32 %v1789_v2, %v1790_v3 }
 0x774   :  { %v1792_v5 = vrot.slane %v1791_v4, 1 }
 0x776   :  { %v3150_v6 = vmax.f32 %v1791_v4, %v1792_v5 }
 0x778   :  { %1810 = vxpose.xlu1.b32.start.end [1/1] (short) (narrow) %v3150_v6, 8  ;;  %v1809_v61 = vsel %vm1806_vm11, %v3150_v6, %v1747_v46 }
 0x7f8   :  { %v1826_v7 = vpop.trf.xlu1 }
 0x7f9   :  { %1845 = vperm.xlu0 %2661, %v1826_v7  }
 0x878   :  { %v1846_v8 = vpop.permute.xlu0 %1845 }
 0x879   :  { %v3153_v9 = vadd.f32 %v1846_v8, %v1842_v31 }
 0x87b   :  { %v1849_v10 = vsel %vm353_vm4, %v3153_v9, -inf }
 0x87c   :  { %v1850_v11 = vrot.slane %v1849_v10, 4 }
 0x87e   :  { %v1851_v12 = vmax.f32 %v1849_v10, %v1850_v11 }
 0x880   :  { %v1852_v13 = vrot.slane %v1851_v12, 2 }
 0x882   :  { %v1853_v14 = vmax.f32 %v1851_v12, %v1852_v13 }
 0x884   :  { %v1854_v15 = vrot.slane %v1853_v14, 1 }
 0x886   :  { %v3157_v16 = vmax.f32 %v1853_v14, %v1854_v15 }
 0x888   :  { %1872 = vxpose.xlu0.b32.start.end [1/1] (short) (narrow) %v3157_v16, 8  ;;  %v1871_v62 = vsel %vm1868_vm12, %v3157_v16, %v1809_v61 }
 0x908   :  { %v1888_v17 = vpop.trf.xlu0 }
 0x909   :  { %1907 = vperm.xlu1 %2662, %v1888_v17  }
 0x988   :  { %v1908_v18 = vpop.permute.xlu1 %1907 }
 0x989   :  { %v3161_v19 = vadd.f32 %v1908_v18, %v3120_v29 }
 0x98b   :  { %v1911_v20 = vsel %vm353_vm4, %v3161_v19, -inf }
 0x98c   :  { %v1912_v21 = vrot.slane %v1911_v20, 4 }
 0x98e   :  { %v1913_v22 = vmax.f32 %v1911_v20, %v1912_v21 }
 0x990   :  { %v1914_v23 = vrot.slane %v1913_v22, 2 }
 0x992   :  { %v1915_v24 = vmax.f32 %v1913_v22, %v1914_v23 }
 0x994   :  { %v1916_v25 = vrot.slane %v1915_v24, 1 }
 0x996   :  { %v3165_v30 = vmax.f32 %v1915_v24, %v1916_v25 }
 0x998   :  { %1934 = vxpose.xlu0.b32.start.end [1/1] (short) (narrow) %v3165_v30, 8  ;;  %v1933_v0 = vsel %vm1930_vm13, %v3165_v30, %v1871_v62 }
 0xa18   :  { %v1950_v31 = vpop.trf.xlu0 }
 0xa19   :  { %1969 = vperm.xlu0 %2661, %v1950_v31  }
 0xa98   :  { %v1970_v32 = vpop.permute.xlu0 %1969 }
 0xa99   :  { %v3169_v33 = vadd.f32 %v1970_v32, %v3127_v42 }
 0xa9b   :  { %v1973_v29 = vsel %vm353_vm4, %v3169_v33, -inf }
 0xa9c   :  { %v1974_v34 = vrot.slane %v1973_v29, 4 }
 0xa9e   :  { %v1975_v35 = vmax.f32 %v1973_v29, %v1974_v34 }
 0xaa0   :  { %v1976_v36 = vrot.slane %v1975_v35, 2 }
 0xaa2   :  { %v1977_v43 = vmax.f32 %v1975_v35, %v1976_v36 }
 0xaa4   :  { %v1978_v47 = vrot.slane %v1977_v43, 1 }
 0xaa6   :  { %v3173_v27 = vmax.f32 %v1977_v43, %v1978_v47 }
 0xaa8   :  { %1996 = vxpose.xlu1.b32.start.end [1/1] (short) (narrow) %v3173_v27, 8  ;;  %v1995_v3 = vsel %vm1992_vm14, %v3173_v27, %v1933_v0  ;;  %vm1980_vm7 = vcmp.eq.f32.partialorder %v3169_v33, %v3173_v27 }
 0xaa9   :  { %v1981_v34 = vsel %vm1980_vm7, %v2821_v28, 8 }
 0xaaa   :  { %v1982_v35 = vsel %vm353_vm4, %v1981_v34, 2147483647 }
 0xaab   :  { %v1983_v36 = vrot.slane %v1982_v35, 4 }
 0xb28   :  { %v2012_v49 = vpop.trf.xlu1 }
 0xb29   :  { %2031 = vperm.xlu0 %2661, %v2012_v49  }
 0xba8   :  { %v2032_v50 = vpop.permute.xlu0 %2031 }
 0xba9   :  { %v2034_v51 = vadd.f32 %v2032_v50, %v3124_v41  ;;  %v2062_v41 = vcvt.s32.f32 %v2816_v26 }
 0xbab   :  { %v2035_v42 = vsel %vm353_vm4, %v2034_v51, -inf }
 0xbac   :  { %v2036_v53 = vrot.slane %v2035_v42, 4 }
 0xbae   :  { %v2037_v54 = vmax.f32 %v2035_v42, %v2036_v53 }
 0xbb0   :  { %v2038_v37 = vrot.slane %v2037_v54, 2 }
 0xbb2   :  { %v2039_v55 = vmax.f32 %v2037_v54, %v2038_v37 }
 0xbb4   :  { %v2040_v56 = vrot.slane %v2039_v55, 1 }
 0xbb6   :  { %v2041_v40 = vmax.f32 %v2039_v55, %v2040_v56 }
 0xbb8   :  { %v2058_v57 = vsel %vm353_vm4, %v2041_v40, -inf  ;;  %v2057_v4 = vsel %vm2054_vm15, %v2041_v40, %v1995_v3  ;;  %vm2042_vm1 = vcmp.eq.f32.partialorder %v2034_v51, %v2041_v40 }
 0xbb9   :  { %2059 = vmax.xlane.f32.xlu0 %v2058_v57  ;;  %v2163_v5 = vsel %vm353_vm4, %v2057_v4, -inf  ;;  %v2043_v7 = vsel %vm2042_vm1, %v2821_v28, 8 }
 0xbba   :  { %v2044_v8 = vsel %vm353_vm4, %v2043_v7, 2147483647 }
 0xbbb   :  { %v2045_v10 = vrot.slane %v2044_v8, 4 }
 0xbbd   :  { %vm2046_vm2 = vcmp.lt.s32.totalorder %v2044_v8, %v2045_v10 }
 0xbbe   :  { %v2047_v11 = vsel %vm2046_vm2, %v2044_v8, %v2045_v10 }
 0xbbf   :  { %v2048_v12 = vrot.slane %v2047_v11, 2 }
 0xbc1   :  { %vm2049_vm3 = vcmp.lt.s32.totalorder %v2047_v11, %v2048_v12 }
 0xbc2   :  { %v2050_v13 = vsel %vm2049_vm3, %v2047_v11, %v2048_v12 }
 0xbc3   :  { %v2051_v14 = vrot.slane %v2050_v13, 1 }
 0xbc5   :  { %vm2052_vm5 = vcmp.lt.s32.totalorder %v2050_v13, %v2051_v14 }
 0xbc6   :  { %v2053_v18 = vsel %vm2052_vm5, %v2050_v13, %v2051_v14  ;;  %vm1918_vm5 = vcmp.eq.f32.partialorder %v3161_v19, %v3165_v30 }
 0xbc7   :  { %v2072_v22 = vcvt.s32.f32 %v2053_v18  ;;  %v1919_v58 = vsel %vm1918_vm5, %v2821_v28, 8 }
 0xc46   :  { %v3194_v59 = vpop.xlane.xlu0 %2059 }
 0xc47   :  { %vm2061_vm0 = vcmp.eq.f32.partialorder %v2041_v40, %v3194_v59 }
 0xc48   :  { %v2063_v52 = vsel %vm2061_vm0, %v2062_v41, 8.0  ;;  %vm1984_vm0 = vcmp.lt.s32.totalorder %v1982_v35, %v1983_v36  ;;  %v1920_v41 = vsel %vm353_vm4, %v1919_v58, 2147483647 }
 0xc49   :  { %v2064_v2 = vsel %vm353_vm4, %v2063_v52, inf  ;;  %v1985_v43 = vsel %vm1984_vm0, %v1982_v35, %v1983_v36  ;;  %v1921_v45 = vrot.slane %v1920_v41, 4 }
 0xc4a   :  { %2065 = vmin.xlane.f32.xlu1 %v2064_v2  ;;  %v1986_v47 = vrot.slane %v1985_v43, 2 }
 0xc4c   :  { %vm1987_vm1 = vcmp.lt.s32.totalorder %v1985_v43, %v1986_v47 }
 0xc4d   :  { %v1988_v49 = vsel %vm1987_vm1, %v1985_v43, %v1986_v47 }
 0xc4e   :  { %2164 = vmax.xlane.f32.xlu1 %v2163_v5  ;;  %v1989_v50 = vrot.slane %v1988_v49, 1 }
 0xc50   :  { %vm1990_vm2 = vcmp.lt.s32.totalorder %v1988_v49, %v1989_v50 }
 0xc51   :  { %v1991_v53 = vsel %vm1990_vm2, %v1988_v49, %v1989_v50  ;;  %vm1856_vm2 = vcmp.eq.f32.partialorder %v3153_v9, %v3157_v16 }
 0xc52   :  { %v2085_v33 = vcvt.s32.f32 %v1991_v53  ;;  %v1857_v11 = vsel %vm1856_vm2, %v2821_v28, 8 }
 0xc53   :  { %v1858_v12 = vsel %vm353_vm4, %v1857_v11, 2147483647 }
 0xc54   :  { %v1859_v13 = vrot.slane %v1858_v12, 4 }
 0xc56   :  { %vm1860_vm5 = vcmp.lt.s32.totalorder %v1858_v12, %v1859_v13 }
 0xc57   :  { %v1861_v14 = vsel %vm1860_vm5, %v1858_v12, %v1859_v13 }
 0xcd7   :  { %v2066_v15 = vpop.xlane.xlu1 %2065 }
 0xcd8   :  { %v2628_v17 = vtrunc.f32 %v2066_v15  ;;  %v1862_v15 = vrot.slane %v1861_v14, 2 }
 0xcda   :  { %v3217_v20 = vcvt.f32.s32 %v2628_v17 }
 0xcdb   :  { %v2165_v21 = vpop.xlane.xlu1 %2164 }
 0xcdc   :  { %v2166_v23 = vsub.f32 %v2057_v4, %v2165_v21  ;;  %vm2071_vm6 = vcmp.eq.s32.totalorder %v2816_v26, %v3217_v20 }
 0xcdd   :  { %v2073_v24 = vsel %vm2071_vm6, %v2072_v22, 0.0  ;;  %vm1922_vm6 = vcmp.lt.s32.totalorder %v1920_v41, %v1921_v45 }
 0xcde   :  { %v2167_v25 = vmul.f32 1.442695, %v2166_v23  ;;  %v2074_v31 = vsel %vm353_vm4, %v2073_v24, 0.0  ;;  %v1923_v46 = vsel %vm1922_vm6, %v1920_v41, %v1921_v45  ;;  %vm1863_vm6 = vcmp.lt.s32.totalorder %v1861_v14, %v1862_v15 }
 0xcdf   :  { %2075 = vadd.xlane.f32.xlu0 %v2074_v31  ;;  %v1924_v61 = vrot.slane %v1923_v46, 2  ;;  %v1864_v17 = vsel %vm1863_vm6, %v1861_v14, %v1862_v15 }
 0xce0   :  { %2663 = vpow2.f32 %v2167_v25 }
 0xce1   :  { %vm1925_vm7 = vcmp.lt.s32.totalorder %v1923_v46, %v1924_v61 }
 0xce2   :  { %v1926_v62 = vsel %vm1925_vm7, %v1923_v46, %v1924_v61 }
 0xce3   :  { %v1927_v52 = vrot.slane %v1926_v62, 1 }
 0xce5   :  { %vm1928_vm0 = vcmp.lt.s32.totalorder %v1926_v62, %v1927_v52 }
 0xce6   :  { %v1929_v3 = vsel %vm1928_vm0, %v1926_v62, %v1927_v52 }
 0xce7   :  { %v2098_v5 = vcvt.s32.f32 %v1929_v3 }
 0xcea   :  { %v2664_v32 = vpop.eup %2663 }
 0xceb   :  { %v2169_v29 = vsel %vm353_vm4, %v2664_v32, 0.0 }
 0xcec   :  { %2170 = vadd.xlane.f32.xlu1 %v2169_v29 }
 0xd6c   :  { %v3227_v51 = vpop.xlane.xlu0 %2075 }
 0xd6d   :  { %v2630_v42 = vtrunc.f32 %v3227_v51 }
 0xd6f   :  { %v3230_v54 = vcvt.f32.s32 %v2630_v42 }
 0xd71   :  { %vm2078_vm3 = vcmp.eq.s32.totalorder %v2816_v26, %v3230_v54 }
 0xd72   :  { %v2086_v37 = vsel %vm2078_vm3, %v2085_v33, 0.0 }
 0xd73   :  { %v2087_v55 = vsel %vm353_vm4, %v2086_v37, 0.0 }
 0xd74   :  { %2088 = vadd.xlane.f32.xlu0 %v2087_v55 }
 0xd79   :  { %v2171_v56 = vpop.xlane.xlu1 %2170 }
 0xd7a   :  { %2665 = vrcp.f32 %v2171_v56 }
 0xd84   :  { %v2666_v40 = vpop.eup %2665 }
 0xd85   :  { %v2173_v57 = vmul.f32 %v2666_v40, %v2664_v32 }
 0xd87   :  { %2174 = vst.msk [vmem:[%s3381_s2] sm:$0xff] %vm353_vm4, %v2173_v57 }
 0xe01   :  { %v3246_v0 = vpop.xlane.xlu0 %2088 }
 0xe02   :  { %v2632_v2 = vtrunc.f32 %v3246_v0 }
 0xe04   :  { %v2633_v4 = vcvt.f32.s32 %v2632_v2 }
 0xe06   :  { %vm2091_vm1 = vcmp.eq.s32.totalorder %v2816_v26, %v2633_v4 }
 0xe07   :  { %v2099_v19 = vsel %vm2091_vm1, %v2098_v5, 0.0  ;;  %v2092_v7 = vsel %vm2091_vm1, %v3165_v30, 0.0  ;;  %v1865_v30 = vrot.slane %v1864_v17, 1  ;;  %vm1794_vm1 = vcmp.eq.f32.partialorder %v3146_v63, %v3150_v6 }
 0xe08   :  { %v2100_v8 = vsel %vm353_vm4, %v2099_v19, 0.0  ;;  %v2093_v10 = vsel %vm353_vm4, %v2092_v7, 0.0  ;;  %v1795_v31 = vsel %vm1794_vm1, %v2821_v28, 8  ;;  %vm1732_vm1 = vcmp.eq.f32.partialorder %v3139_v39, %v3143_v60 }
 0xe09   :  { %2101 = vadd.xlane.f32.xlu0 %v2100_v8  ;;  %2094 = vadd.xlane.f32.xlu1 %v2093_v10  ;;  %vm1866_vm7 = vcmp.lt.s32.totalorder %v1864_v17, %v1865_v30  ;;  %v1796_v32 = vsel %vm353_vm4, %v1795_v31, 2147483647  ;;  %v1733_v56 = vsel %vm1732_vm1, %v2821_v28, 8  ;;  %vm1670_vm1 = vcmp.eq.f32.partialorder %v3132_v48, %v3136_v38 }
 0xe0a   :  { %v1867_v22 = vsel %vm1866_vm7, %v1864_v17, %v1865_v30  ;;  %v1797_v29 = vrot.slane %v1796_v32, 4  ;;  %v1734_v40 = vsel %vm353_vm4, %v1733_v56, 2147483647  ;;  %v1671_v4 = vsel %vm1670_vm1, %v2821_v28, 8 }
 0xe0b   :  { %v2111_v9 = vcvt.s32.f32 %v1867_v22  ;;  %v1735_v57 = vrot.slane %v1734_v40, 4  ;;  %v1672_v5 = vsel %vm353_vm4, %v1671_v4, 2147483647 }
 0xe0c   :  { %vm1798_vm2 = vcmp.lt.s32.totalorder %v1796_v32, %v1797_v29  ;;  %v1673_v19 = vrot.slane %v1672_v5, 4 }
 0xe0d   :  { %v1799_v34 = vsel %vm1798_vm2, %v1796_v32, %v1797_v29  ;;  %vm1736_vm2 = vcmp.lt.s32.totalorder %v1734_v40, %v1735_v57 }
 0xe0e   :  { %v1800_v35 = vrot.slane %v1799_v34, 2  ;;  %v1737_v58 = vsel %vm1736_vm2, %v1734_v40, %v1735_v57  ;;  %vm1674_vm2 = vcmp.lt.s32.totalorder %v1672_v5, %v1673_v19 }
 0xe0f   :  { %v1738_v41 = vrot.slane %v1737_v58, 2  ;;  %v1675_v7 = vsel %vm1674_vm2, %v1672_v5, %v1673_v19 }
 0xe10   :  { %vm1801_vm5 = vcmp.lt.s32.totalorder %v1799_v34, %v1800_v35  ;;  %v1676_v8 = vrot.slane %v1675_v7, 2 }
 0xe11   :  { %v1802_v36 = vsel %vm1801_vm5, %v1799_v34, %v1800_v35  ;;  %vm1739_vm5 = vcmp.lt.s32.totalorder %v1737_v58, %v1738_v41 }
 0xe12   :  { %v1803_v43 = vrot.slane %v1802_v36, 1  ;;  %v1740_v45 = vsel %vm1739_vm5, %v1737_v58, %v1738_v41  ;;  %vm1677_vm5 = vcmp.lt.s32.totalorder %v1675_v7, %v1676_v8 }
 0xe13   :  { %v1678_v10 = vsel %vm1677_vm5, %v1675_v7, %v1676_v8 }
 0xe14   :  { %vm1804_vm6 = vcmp.lt.s32.totalorder %v1802_v36, %v1803_v43  ;;  %v1679_v11 = vrot.slane %v1678_v10, 1 }
 0xe15   :  { %v1805_v50 = vsel %vm1804_vm6, %v1802_v36, %v1803_v43 }
 0xe16   :  { %v2124_v53 = vcvt.s32.f32 %v1805_v50 }
 0xe96   :  { %v3257_v18 = vpop.xlane.xlu0 %2101 }
 0xe97   :  { %v2634_v21 = vtrunc.f32 %v3257_v18 }
 0xe99   :  { %v3260_v23 = vcvt.f32.s32 %v2634_v21 }
 0xe9b   :  { %vm2104_vm0 = vcmp.eq.s32.totalorder %v2816_v26, %v3260_v23 }
 0xe9c   :  { %v2112_v24 = vsel %vm2104_vm0, %v2111_v9, 0.0  ;;  %v2079_v9 = vsel %vm2078_vm3, %v3173_v27, 0.0  ;;  %v2068_v27 = vcvt.s32.f32 %v3217_v20  ;;  %vm3384_vm3 = vcmp.eq.s32.totalorder %v2821_v28, 0 }
 0xe9d   :  { %v2113_v25 = vsel %vm353_vm4, %v2112_v24, 0.0  ;;  %v2080_v24 = vsel %vm353_vm4, %v2079_v9, 0.0 }
 0xe9e   :  { %2114 = vadd.xlane.f32.xlu0 %v2113_v25  ;;  %v2105_v25 = vsel %vm2104_vm0, %v3157_v16, 0.0  ;;  %v2069_v54 = vsel %vm2054_vm15, %v2068_v27, 0.0 }
 0xe9f   :  { %v2083_v23 = vsel %vm1992_vm14, %v3227_v51, %v2069_v54 }
 0xea0   :  { %v2096_v16 = vsel %vm1930_vm13, %v3246_v0, %v2083_v23 }
 0xf2b   :  { %v3272_v47 = vpop.xlane.xlu0 %2114 }
 0xf2c   :  { %v2636_v49 = vtrunc.f32 %v3272_v47 }
 0xf2e   :  { %v2637_v42 = vcvt.f32.s32 %v2636_v49 }
 0xf30   :  { %vm2117_vm7 = vcmp.eq.s32.totalorder %v2816_v26, %v2637_v42 }
 0xf31   :  { %v2125_v63 = vsel %vm2117_vm7, %v2124_v53, 0.0  ;;  %v2118_v33 = vsel %vm2117_vm7, %v3150_v6, 0.0  ;;  %v1741_v6 = vrot.slane %v1740_v45, 1 }
 0xf32   :  { %v2126_v37 = vsel %vm353_vm4, %v2125_v63, 0.0  ;;  %v2119_v55 = vsel %vm353_vm4, %v2118_v33, 0.0 }
 0xf33   :  { %2127 = vadd.xlane.f32.xlu0 %v2126_v37  ;;  %2120 = vadd.xlane.f32.xlu1 %v2119_v55  ;;  %vm1742_vm6 = vcmp.lt.s32.totalorder %v1740_v45, %v1741_v6 }
 0xf34   :  { %v1743_v62 = vsel %vm1742_vm6, %v1740_v45, %v1741_v6  ;;  %vm1680_vm6 = vcmp.lt.s32.totalorder %v1678_v10, %v1679_v11 }
 0xf35   :  { %v2137_v2 = vcvt.s32.f32 %v1743_v62  ;;  %v1681_v14 = vsel %vm1680_vm6, %v1678_v10, %v1679_v11 }
 0xf36   :  { %v2150_v17 = vcvt.s32.f32 %v1681_v14 }
 0xfc0   :  { %v2128_v46 = vpop.xlane.xlu0 %2127 }
 0xfc1   :  { %v2638_v61 = vtrunc.f32 %v2128_v46 }
 0xfc3   :  { %v2639_v52 = vcvt.f32.s32 %v2638_v61 }
 0xfc5   :  { %vm2130_vm7 = vcmp.eq.s32.totalorder %v2816_v26, %v2639_v52 }
 0xfc6   :  { %v2138_v39 = vsel %vm2130_vm7, %v2137_v2, 0.0  ;;  %v2131_v31 = vsel %vm2130_vm7, %v3143_v60, 0.0  ;;  %v2109_v60 = vsel %vm1868_vm12, %v3257_v18, %v2096_v16 }
 0xfc7   :  { %v2139_v3 = vsel %vm353_vm4, %v2138_v39, 0.0  ;;  %v2132_v32 = vsel %vm353_vm4, %v2131_v31, 0.0  ;;  %v2122_v29 = vsel %vm1806_vm11, %v3272_v47, %v2109_v60 }
 0xfc8   :  { %2140 = vadd.xlane.f32.xlu0 %v2139_v3  ;;  %v2135_v20 = vsel %vm1744_vm10, %v2128_v46, %v2122_v29 }
0x1055   :  { %v2141_v12 = vpop.xlane.xlu0 %2140 }
0x1056   :  { %v2640_v13 = vtrunc.f32 %v2141_v12  ;;  %v2148_v34 = vsel %vm1682_vm9, %v2141_v12, %v2135_v20 }
0x1058   :  { %v2641_v15 = vcvt.f32.s32 %v2640_v13 }
0x105a   :  { %vm2143_vm8 = vcmp.eq.s32.totalorder %v2816_v26, %v2641_v15 }
0x105b   :  { %v2151_v48 = vsel %vm2143_vm8, %v2150_v17, 0.0  ;;  %v2144_v30 = vsel %vm2143_vm8, %v3136_v38, 0.0  ;;  %v2106_v38 = vsel %vm353_vm4, %v2105_v25, 0.0  ;;  %vm2175_vm8 = vcmask 72768  }
0x105c   :  { %v2152_v21 = vsel %vm353_vm4, %v2151_v48, 0.0  ;;  %v2145_v22 = vsel %vm353_vm4, %v2144_v30, 0.0 }
0x105d   :  { %2153 = vadd.xlane.f32.xlu0 %v2152_v21  ;;  %2146 = vadd.xlane.f32.xlu1 %v2145_v22 }
0x1061   :  { %2081 = vadd.xlane.f32.xlu0 %v2080_v24 }
0x1065   :  { %2107 = vadd.xlane.f32.xlu0 %v2106_v38 }
0x1069   :  { %2133 = vadd.xlane.f32.xlu0 %v2132_v32 }
0x10ea   :  { %v2154_v51 = vpop.xlane.xlu0 %2153 }
0x10eb   :  { %v2642_v35 = vtrunc.f32 %v2154_v51  ;;  %v2161_v0 = vsel %vm3384_vm3, %v2154_v51, %v2148_v34 }
0x10ec   :  { %2176 = vst.msk [vmem:[%s3381_s2] sm:$0xff] %vm2175_vm8, %v2161_v0 }
0x10ed   :  { %v2643_v18 = vcvt.f32.s32 %v2642_v35 }
0x10ef   :  { %vm2156_vm0 = vcmp.eq.s32.totalorder %v2816_v26, %v2643_v18 }
0x10f0   :  { %v2157_v36 = vsel %vm2156_vm0, %v3129_v44, 0.0 }
0x10f1   :  { %v2158_v43 = vsel %vm353_vm4, %v2157_v36, 0.0 }
0x10f2   :  { %2159 = vadd.xlane.f32.xlu0 %v2158_v43 }
0x10f3   :  { %2722 = shalt.err (!%p2719_p6)
}
0x10f4   :  { %s2723_s25 = scalar_lea.hbm %s3382_s3, 1024 }
0x10f5   :  { %p2724_p7 = scmp.ne.s32.totalorder %s3382_s3, %s2723_s25  ;;  %p2727_p8 = scmp.lt.u32.totalorder %s2723_s25, %s3382_s3 }
0x10f7   :  { %p2729_p9 = pnand %p2727_p8, %p2724_p7 }
0x10f9   :  { %2732 = shalt.err (!%p2729_p9)
}
0x10fa   :  { %2197 = dma.vmem_to_hbm [thread:$0]  %s2192_s21, 1024, %s3382_s3, [#allocation4], %s2741_s0, %s2741_s0, %s2742_s7   ;;  %v2082_v26 = vpop.xlane.xlu0 %2081  ;;  %v2070_v44 = vsel %vm2054_vm15, %v3194_v59, 0.0  ;;  %v2095_v50 = vpop.xlane.xlu1 %2094  ;;  %vm2177_vm4 = vcmask 80968   ;;  %vm2180_vm15 = vcmask 89168  }
0x10fb   :  { %v2084_v49 = vsel %vm1992_vm14, %v2082_v26, %v2070_v44  ;;  %vm2182_vm14 = vcmask 1047640  }
0x10fc   :  { %v2097_v42 = vsel %vm1930_vm13, %v2095_v50, %v2084_v49  ;;  %vm3385_vm13 = vmmov %vm3384_vm3 }
0x10fe   :  { %v2108_v47 = vpop.xlane.xlu0 %2107  ;;  %v2121_v33 = vpop.xlane.xlu1 %2120 }
0x10ff   :  { %v2110_v53 = vsel %vm1868_vm12, %v2108_v47, %v2097_v42 }
0x1100   :  { %v2123_v37 = vsel %vm1806_vm11, %v2121_v33, %v2110_v53 }
0x1102   :  { %v2134_v63 = vpop.xlane.xlu0 %2133  ;;  %v2147_v56 = vpop.xlane.xlu1 %2146 }
0x1103   :  { %v2136_v55 = vsel %vm1744_vm10, %v2134_v63, %v2123_v37 }
0x1104   :  { %v2149_v57 = vsel %vm1682_vm9, %v2147_v56, %v2136_v55 }
0x117f   :  { %v2160_v40 = vpop.xlane.xlu0 %2159 }
0x1180   :  { %v2162_v58 = vsel %vm3385_vm13, %v2160_v40, %v2149_v57 }
0x1181   :  { %2178 = vst.msk [vmem:[%s3381_s2] sm:$0xff] %vm2177_vm4, %v2162_v58 }
0x1182   :  { %2181 = vst.msk [vmem:[%s3381_s2] sm:$0xff] %vm2180_vm15, %v3194_v59 }
0x1183   :  { %2183 = vst.msk [vmem:[%s3381_s2] sm:$0xff] %vm2182_vm14, %v2745_v1 }
0x1184   :  { %2737 = dma.done.wait [#allocation4], 1024  }
0x1185   :  { %2738 = vsyncadd [#allocation4], 4294966272 }
0x1186   :  { %2203 = vsyncpa [#allocation3], 1 }
0x1187   :  { %2204 = vsyncpa [#allocation6], 1 }
0x1188   :  { %2205 = vsyncpa [#allocation4], 1 }

</bundles_post_ra>
